<compile_context>
chip_gen: v6e
topology: v6e:2x2x1
jax: 0.10.0
libtpu: 0.0.40
codegen_flags: <defaults>
</compile_context>

<pallas_src>
import math

import numpy as np
import jax
import jax.numpy as jnp
from jax import lax
from jax.experimental import pallas as pl
from jax.experimental.pallas import tpu as pltpu


NUM_CHANNELS = (4, 8, 16)
KERNEL_SIZES = (3, 3, 3)
LANE = 128                 # fixed (zero-padded) lane width of every activation
TAPK = 3 * LANE            # contraction size of the folded 3-tap conv matmul


# ----------------------------- parameter init ---------------------------------

def init_params(key, num_channels_list=NUM_CHANNELS, kernel_size_list=KERNEL_SIZES):
    """PyTorch Conv2d-style init: U(-1/sqrt(fan_in), +1/sqrt(fan_in))."""
    def conv_init(k, cin, cout, ks):
        kw, kb = jax.random.split(k)
        bound = 1.0 / math.sqrt(cin * ks * ks)
        w = jax.random.uniform(kw, (cout, cin, ks, ks), jnp.float32, -bound, bound)
        b = jax.random.uniform(kb, (cout,), jnp.float32, -bound, bound)
        return (w, b)

    keys = jax.random.split(key, len(num_channels_list) * 3)
    ki = 0
    params = {"encoder": [], "decoder1": [], "decoder2": []}
    last = 1
    for i, nc in enumerate(num_channels_list):
        params["encoder"].append(conv_init(keys[ki], last, nc, kernel_size_list[i]))
        ki += 1
        last = nc
    dec_outs = list(num_channels_list[::-1][1:]) + [1]
    dec_ks = list(kernel_size_list[::-1])
    for dec in ("decoder1", "decoder2"):
        last = num_channels_list[-1]
        for i, nc in enumerate(dec_outs):
            params[dec].append(conv_init(keys[ki], last, nc, dec_ks[i]))
            ki += 1
            last = nc
    return params


# --------------------- host-side constant-matrix builders ----------------------
# Activation layout inside the kernel: A[(s*H + y), (x*C + c)], lane-padded to 128.

def _conv_col_mat(w, W, ky):
    """(W*Cin, W*Cout) for vertical tap ky: folds horizontal taps + Cin->Cout mix."""
    Cout, Cin, K, _ = w.shape
    p = K // 2
    m = np.zeros((W * Cin, W * Cout), np.float32)
    for xo in range(W):
        for kx in range(K):
            xi = xo + kx - p
            if 0 <= xi < W:
                m[xi * Cin:(xi + 1) * Cin, xo * Cout:(xo + 1) * Cout] = w[:, :, ky, kx].T
    return m


def _conv_stack(w, W):
    """(3*LANE, LANE): the 3 vertical taps stacked along the contraction axis.

    Rows [ky*LANE, ky*LANE + W*Cin) hold the ky-th tap matrix; everything else is 0,
    so lane padding of the activations contributes exactly zero.
    """
    Cout, Cin, K, _ = w.shape
    assert K == 3, "kernel specialized for 3x3 convs (module default)"
    assert W * Cin <= LANE and W * Cout <= LANE, "layer too wide for 128-lane padding"
    m = np.zeros((TAPK, LANE), np.float32)
    for ky in range(K):
        m[ky * LANE: ky * LANE + W * Cin, :W * Cout] = _conv_col_mat(w, W, ky)
    return m


def _pool_row_sel(S, H):
    """(S*H/2, S*H): select row (s, 2*yo) -> (s, yo); block-diagonal per sample."""
    m = np.zeros((S * (H // 2), S * H), np.float32)
    for s in range(S):
        for yo in range(H // 2):
            m[s * (H // 2) + yo, s * H + 2 * yo] = 1.0
    return m


def _pool_col_sel(W, C):
    """(LANE, LANE): select column 2*xo*C + c -> xo*C + c."""
    m = np.zeros((LANE, LANE), np.float32)
    for xo in range(W // 2):
        for c in range(C):
            m[2 * xo * C + c, xo * C + c] = 1.0
    return m


def _up_row_dup(S, H):
    """(S*2H, S*H): nearest row duplication, block-diagonal per sample."""
    m = np.zeros((S * 2 * H, S * H), np.float32)
    for s in range(S):
        for yo in range(2 * H):
            m[s * 2 * H + yo, s * H + yo // 2] = 1.0
    return m


def _up_col_dup(W, C):
    """(LANE, LANE): nearest column duplication (channel preserving)."""
    m = np.zeros((LANE, LANE), np.float32)
    for x in range(W):
        for dx in range(2):
            for c in range(C):
                m[x * C + c, (2 * x + dx) * C + c] = 1.0
    return m


def _pack(mats, dtype):
    r = max(m.shape[0] for m in mats)
    c = max(m.shape[1] for m in mats)
    out = np.zeros((len(mats), r, c), np.float32)
    for i, m in enumerate(mats):
        out[i, :m.shape[0], :m.shape[1]] = m
    return jnp.asarray(out, dtype)


def _build_plan(params, S, H0, W0):
    """Static execution plan + packed constants for a group of S images."""
    convw, biases, rowm, colm = [], [], [], []
    plan = []
    H, W = H0, W0
    Cin = int(np.asarray(params["encoder"][0][0]).shape[1])
    cin0 = Cin

    def add_conv(w_np, b_np, W):
        Cout = w_np.shape[0]
        convw.append(_conv_stack(w_np, W))
        brow = np.zeros((1, LANE), np.float32)
        brow[0, :W * Cout] = np.tile(b_np, W)        # bias at column x*Cout + c
        biases.append(brow)
        return len(convw) - 1, Cout

    # --- encoder stages: conv + ReLU, fused 2x2 max-pool epilogue ---
    for (w, b) in params["encoder"]:
        w_np = np.asarray(w, np.float32)
        b_np = np.asarray(b, np.float32)
        assert w_np.shape[1] == Cin and H % 2 == 0 and W % 2 == 0
        ci, Cout = add_conv(w_np, b_np, W)
        rowm.append(_pool_row_sel(S, H))
        colm.append(_pool_col_sel(W, Cout))
        plan.append(dict(kind="pool", conv=ci, rows=S * H, hh=H, cout=Cout,
                         rsel=len(rowm) - 1, csel=len(colm) - 1))
        H, W, Cin = H // 2, W // 2, Cout

    # --- decoders, channel-batched: output channels ordered [dec1 | dec2] ---
    for li, ((w1, b1), (w2, b2)) in enumerate(zip(params["decoder1"], params["decoder2"])):
        w1 = np.asarray(w1, np.float32)
        w2 = np.asarray(w2, np.float32)
        b1 = np.asarray(b1, np.float32)
        b2 = np.asarray(b2, np.float32)
        Co, Ci, K, _ = w1.shape
        if li == 0:
            wcat = np.concatenate([w1, w2], axis=0)                 # shared encoder input
        else:
            wcat = np.zeros((2 * Co, 2 * Ci, K, K), np.float32)     # keep branches separate
            wcat[:Co, :Ci] = w1
            wcat[Co:, Ci:] = w2
        bcat = np.concatenate([b1, b2], axis=0)
        assert wcat.shape[1] == Cin
        ci, CoutB = add_conv(wcat, bcat, W)
        rowm.append(_up_row_dup(S, H))
        colm.append(_up_col_dup(W, CoutB))
        plan.append(dict(kind="up", conv=ci, rows=S * H, hh=H, cout=CoutB,
                         rsel=len(rowm) - 1, csel=len(colm) - 1))
        H, W, Cin = 2 * H, 2 * W, CoutB

    assert Cin == 2 and H == H0 and W == W0, "expected one output channel per decoder"

    return (plan,
            _pack(convw, jnp.bfloat16),      # (n_conv, 3*LANE, LANE)
            _pack(biases, jnp.float32),      # (n_conv, 1, LANE)
            _pack(rowm, jnp.bfloat16),       # (n_stage, S*H0, S*H0)
            _pack(colm, jnp.bfloat16),       # (n_stage, LANE, LANE)
            cin0)


# ------------------------------ fused forward ----------------------------------

def make_forward(params, N, H0, W0):
    """Returns a jitted forward(x_nchw) -> (y1, y2); whole net is one Pallas kernel."""
    # Split the batch into groups: one grid step per group.  On v7x the "parallel"
    # grid axis shards the two groups across the two TensorCores; on v5e/v6e it is a
    # cheap 2-step sequential loop.  Larger real batches amortize even better.
    n_groups = 2 if (N % 2 == 0 and N >= 2) else 1
    S = N // n_groups

    plan, convw, biasc, rowm, colm, cin0 = _build_plan(params, S, H0, W0)
    assert W0 * cin0 <= LANE
    blk_rows = S * H0

    def kernel(x_ref, convw_ref, bias_ref, rowm_ref, colm_ref, out_ref):
        def mm(a, b):
            # MXU operands in bf16, accumulation in f32 (explicit precision choice).
            return jnp.dot(a.astype(jnp.bfloat16), b.astype(jnp.bfloat16),
                           preferred_element_type=jnp.float32)

        yloc_cache = {}

        def yloc(rows, hh):
            # per-row "y within the image" index, broadcast over lanes
            key = (rows, hh)
            if key not in yloc_cache:
                yloc_cache[key] = lax.broadcasted_iota(jnp.int32, (rows, LANE), 0) % hh
            return yloc_cache[key]

        act = x_ref[...]                                   # (rows, 128) f32, pad cols = 0
        for st in plan:
            rows, hh, C = st["rows"], st["hh"], st["cout"]
            yl = yloc(rows, hh)
            # conv3x3 'same': three vertical taps folded into one K=3*128 matmul.
            # Row shifts via sublane roll (XLU); image-boundary rows zeroed (== zero pad).
            up = jnp.where(yl > 0, pltpu.roll(act, shift=1, axis=0), 0.0)
            dn = jnp.where(yl < hh - 1, pltpu.roll(act, shift=rows - 1, axis=0), 0.0)
            cat = jnp.concatenate([up, act, dn], axis=1)   # (rows, 3*128), lane-aligned
            conv = jnp.maximum(mm(cat, convw_ref[st["conv"]]) + bias_ref[st["conv"]], 0.0)
            if st["kind"] == "pool":
                # 2x2 max-pool: pair-max via roll+max (VPU/XLU), compaction via 2 matmuls
                rmax = jnp.maximum(conv, pltpu.roll(conv, shift=rows - 1, axis=0))
                rsel = mm(rowm_ref[st["rsel"], :rows // 2, :rows], rmax)
                cmax = jnp.maximum(rsel, pltpu.roll(rsel, shift=LANE - C, axis=1))
                act = mm(cmax, colm_ref[st["csel"]])
            else:
                # nearest-neighbour x2 upsample: row duplication + column duplication
                rdup = mm(rowm_ref[st["rsel"], :2 * rows, :rows], conv)
                act = mm(rdup, colm_ref[st["csel"]])
        # Lane-dense 128-wide store; columns x*2+{0,1} interleave the two decoders,
        # pad columns are exactly zero.  De-interleaving happens in the JAX wrapper.
        out_ref[...] = act

    call = pl.pallas_call(
        kernel,
        out_shape=jax.ShapeDtypeStruct((N * H0, LANE), jnp.float32),
        grid=(n_groups,),
        in_specs=[
            pl.BlockSpec((blk_rows, LANE), lambda g: (g, 0)),
            pl.BlockSpec(convw.shape, lambda g: (0, 0, 0)),
            pl.BlockSpec(biasc.shape, lambda g: (0, 0, 0)),
            pl.BlockSpec(rowm.shape, lambda g: (0, 0, 0)),
            pl.BlockSpec(colm.shape, lambda g: (0, 0, 0)),
        ],
        out_specs=pl.BlockSpec((blk_rows, LANE), lambda g: (g, 0)),
        compiler_params=pltpu.CompilerParams(dimension_semantics=("parallel",)),
    )

    @jax.jit
    def forward(x_nchw):
        n, c, h, w = x_nchw.shape
        assert (n, c, h, w) == (N, cin0, H0, W0), "forward built for a fixed shape"
        # NCHW -> A[(n*H + y), (x*C + c)], zero-padded to 128 lanes
        x2d = jnp.transpose(x_nchw.astype(jnp.float32), (0, 2, 3, 1)).reshape(n * h, w * c)
        xpad = jnp.zeros((n * h, LANE), jnp.float32).at[:, :w * c].set(x2d)
        o = call(xpad, convw, biasc, rowm, colm)
        valid = o[:, :2 * W0].reshape(n, H0, W0, 2)        # last dim: 0 -> dec1, 1 -> dec2
        y1 = valid[..., 0][:, None, :, :]
        y2 = valid[..., 1][:, None, :, :]
        return y1, y2

    return forward


# ------------------------- plain-XLA reference (for check) ---------------------

def _reference_forward(params, x):
    hi = lax.Precision.HIGHEST

    def conv(h, w, b):
        p = w.shape[-1] // 2
        y = lax.conv_general_dilated(h, w, (1, 1), [(p, p), (p, p)],
                                     dimension_numbers=("NCHW", "OIHW", "NCHW"),
                                     precision=hi)
        return jax.nn.relu(y + b[None, :, None, None])

    def pool(h):
        return lax.reduce_window(h, -jnp.inf, lax.max, (1, 1, 2, 2), (1, 1, 2, 2), "VALID")

    def up(h):
        return jnp.repeat(jnp.repeat(h, 2, axis=2), 2, axis=3)

    h = x
    for (w, b) in params["encoder"]:
        h = pool(conv(h, w, b))
    outs = []
    for dec in ("decoder1", "decoder2"):
        y = h
        for (w, b) in params[dec]:
            y = up(conv(y, w, b))
        outs.append(y)
    return tuple(outs)


# ------------------------------------ main --------------------------------------

if __name__ == "__main__":
    key = jax.random.PRNGKey(0)
    pkey, xkey = jax.random.split(key)
    params = init_params(pkey)

    N, C, H, W = 2, 1, 16, 16
    x = jax.random.normal(xkey, (N, C, H, W), dtype=jnp.float32)

    forward = make_forward(params, N, H, W)
    y1, y2 = forward(x)
    jax.block_until_ready((y1, y2))

    assert y1.shape == (N, 1, H, W) and y2.shape == (N, 1, H, W), (y1.shape, y2.shape)
    assert y1.dtype == jnp.float32 and y2.dtype == jnp.float32

    # Correctness check against a HIGHEST-precision XLA reference of the same module.
    # Tolerance accounts for the deliberate bf16 MXU operands (f32 accumulation);
    # any structural bug (shift/mask/pool/upsample) would produce O(0.1-1) errors.
    r1, r2 = _reference_forward(params, x)
    err = max(float(jnp.max(jnp.abs(y1 - r1))), float(jnp.max(jnp.abs(y2 - r2))))
    assert err < 4e-2, f"mismatch vs reference: max abs err {err}"

    print("KERNEL_OK")
</pallas_src>

<mosaic_0001>
module attributes {stable_mosaic.version = 11 : i64} {
  func.func @kernel(%arg0: i32, %arg1: memref<16x128xf32, #tpu.memory_space<vmem>>, %arg2: memref<6x384x128xbf16, #tpu.memory_space<vmem>>, %arg3: memref<6x1x128xf32, #tpu.memory_space<vmem>>, %arg4: memref<6x16x16xbf16, #tpu.memory_space<vmem>>, %arg5: memref<6x128x128xbf16, #tpu.memory_space<vmem>>, %arg6: memref<16x128xf32, #tpu.memory_space<vmem>>) attributes {dimension_semantics = [#tpu.dimension_semantics<parallel>], iteration_bounds = array<i64: 2>, scalar_prefetch = 0 : i64, scratch_operands = 0 : i64, tpu.core_type = #tpu.core_type<tc>, window_params = [{transform_indices = @transform_0, window_bounds = array<i64: 16, 128>}, {pipeline_mode = #tpu.pipeline_mode<synchronous>, transform_indices = @transform_1, window_bounds = array<i64: 6, 384, 128>}, {pipeline_mode = #tpu.pipeline_mode<synchronous>, transform_indices = @transform_2, window_bounds = array<i64: 6, 1, 128>}, {pipeline_mode = #tpu.pipeline_mode<synchronous>, transform_indices = @transform_3, window_bounds = array<i64: 6, 16, 16>}, {pipeline_mode = #tpu.pipeline_mode<synchronous>, transform_indices = @transform_4, window_bounds = array<i64: 6, 128, 128>}, {transform_indices = @transform_5, window_bounds = array<i64: 16, 128>}]} {
    %c0 = arith.constant 0 : index
    %c0_0 = arith.constant 0 : index
    %0 = vector.load %arg1[%c0, %c0_0] : memref<16x128xf32, #tpu.memory_space<vmem>>, vector<16x128xf32>
    %1 = tpu.iota {dimensions = array<i32: 0>} : vector<16x128xi32>
    %c16_i32 = arith.constant 16 : i32
    %c0_i32 = arith.constant 0 : i32
    %2 = arith.cmpi eq, %c16_i32, %c0_i32 : i32
    %c1_i32 = arith.constant 1 : i32
    %3 = arith.select %2, %c1_i32, %c16_i32 : i32
    %4 = vector.broadcast %3 : i32 to vector<16x128xi32>
    %5 = arith.remsi %1, %4 : vector<16x128xi32>
    %c0_i32_1 = arith.constant 0 : i32
    %6 = vector.broadcast %c0_i32_1 : i32 to vector<16x128xi32>
    %7 = arith.cmpi ne, %5, %6 : vector<16x128xi32>
    %c0_i32_2 = arith.constant 0 : i32
    %8 = vector.broadcast %c0_i32_2 : i32 to vector<16x128xi32>
    %9 = arith.cmpi slt, %5, %8 : vector<16x128xi32>
    %c0_i32_3 = arith.constant 0 : i32
    %10 = arith.cmpi slt, %3, %c0_i32_3 : i32
    %11 = vector.broadcast %10 : i1 to vector<16x128xi1>
    %12 = vector.broadcast %11 : vector<16x128xi1> to vector<16x128xi1>
    %13 = arith.xori %9, %12 : vector<16x128xi1>
    %14 = arith.andi %13, %7 : vector<16x128xi1>
    %15 = vector.broadcast %3 : i32 to vector<16x128xi32>
    %16 = arith.addi %5, %15 : vector<16x128xi32>
    %17 = arith.select %14, %16, %5 : vector<16x128xi1>, vector<16x128xi32>
    %c0_i32_4 = arith.constant 0 : i32
    %18 = vector.broadcast %c0_i32_4 : i32 to vector<16x128xi32>
    %19 = arith.cmpi sgt, %17, %18 : vector<16x128xi32>
    %c1_i32_5 = arith.constant 1 : i32
    %20 = tpu.dynamic_rotate %0 by %c1_i32_5 dim 0 : vector<16x128xf32>, i32 -> vector<16x128xf32>
    %cst = arith.constant 0.000000e+00 : f32
    %21 = vector.broadcast %cst : f32 to vector<16x128xf32>
    %22 = arith.select %19, %20, %21 : vector<16x128xi1>, vector<16x128xf32>
    %c15_i32 = arith.constant 15 : i32
    %23 = vector.broadcast %c15_i32 : i32 to vector<16x128xi32>
    %24 = arith.cmpi slt, %17, %23 : vector<16x128xi32>
    %c15_i32_6 = arith.constant 15 : i32
    %25 = tpu.dynamic_rotate %0 by %c15_i32_6 dim 0 : vector<16x128xf32>, i32 -> vector<16x128xf32>
    %cst_7 = arith.constant 0.000000e+00 : f32
    %26 = vector.broadcast %cst_7 : f32 to vector<16x128xf32>
    %27 = arith.select %24, %25, %26 : vector<16x128xi1>, vector<16x128xf32>
    %28 = tpu.concatenate %22, %0, %27 in 1 : vector<16x128xf32>, vector<16x128xf32>, vector<16x128xf32> -> vector<16x384xf32>
    %c0_8 = arith.constant 0 : index
    %c0_9 = arith.constant 0 : index
    %c0_10 = arith.constant 0 : index
    %29 = vector.load %arg2[%c0_8, %c0_9, %c0_10] : memref<6x384x128xbf16, #tpu.memory_space<vmem>>, vector<1x384x128xbf16>
    %30 = vector.shape_cast %29 : vector<1x384x128xbf16> to vector<384x128xbf16>
    %31 = arith.truncf %28 : vector<16x384xf32> to vector<16x384xbf16>
    %cst_11 = arith.constant dense<0.000000e+00> : vector<16x128xf32>
    %32 = tpu.matmul %31, %30, %cst_11 {dimension_numbers = #tpu.dot_dimension_numbers<[1], [0], [0], [1], [0, 0, 1, 1], [], []>} : vector<16x384xbf16>, vector<384x128xbf16>, vector<16x128xf32> -> vector<16x128xf32>
    %c0_12 = arith.constant 0 : index
    %c0_13 = arith.constant 0 : index
    %c0_14 = arith.constant 0 : index
    %33 = vector.load %arg3[%c0_12, %c0_13, %c0_14] : memref<6x1x128xf32, #tpu.memory_space<vmem>>, vector<1x1x128xf32>
    %34 = vector.shape_cast %33 : vector<1x1x128xf32> to vector<1x128xf32>
    %35 = vector.broadcast %34 : vector<1x128xf32> to vector<16x128xf32>
    %36 = arith.addf %32, %35 : vector<16x128xf32>
    %cst_15 = arith.constant 0.000000e+00 : f32
    %37 = vector.broadcast %cst_15 : f32 to vector<16x128xf32>
    %38 = arith.maximumf %36, %37 : vector<16x128xf32>
    %c15_i32_16 = arith.constant 15 : i32
    %39 = tpu.dynamic_rotate %38 by %c15_i32_16 dim 0 : vector<16x128xf32>, i32 -> vector<16x128xf32>
    %40 = arith.maximumf %38, %39 : vector<16x128xf32>
    %c0_17 = arith.constant 0 : index
    %c0_18 = arith.constant 0 : index
    %c0_19 = arith.constant 0 : index
    %41 = vector.load %arg4[%c0_17, %c0_18, %c0_19] : memref<6x16x16xbf16, #tpu.memory_space<vmem>>, vector<1x8x16xbf16>
    %42 = vector.shape_cast %41 : vector<1x8x16xbf16> to vector<8x16xbf16>
    %43 = arith.truncf %40 : vector<16x128xf32> to vector<16x128xbf16>
    %cst_20 = arith.constant dense<0.000000e+00> : vector<8x128xf32>
    %44 = tpu.matmul %42, %43, %cst_20 {dimension_numbers = #tpu.dot_dimension_numbers<[1], [0], [0], [1], [0, 0, 1, 1], [], []>} : vector<8x16xbf16>, vector<16x128xbf16>, vector<8x128xf32> -> vector<8x128xf32>
    %c124_i32 = arith.constant 124 : i32
    %45 = tpu.dynamic_rotate %44 by %c124_i32 dim 1 : vector<8x128xf32>, i32 -> vector<8x128xf32>
    %46 = arith.maximumf %44, %45 : vector<8x128xf32>
    %c0_21 = arith.constant 0 : index
    %c0_22 = arith.constant 0 : index
    %c0_23 = arith.constant 0 : index
    %47 = vector.load %arg5[%c0_21, %c0_22, %c0_23] : memref<6x128x128xbf16, #tpu.memory_space<vmem>>, vector<1x128x128xbf16>
    %48 = vector.shape_cast %47 : vector<1x128x128xbf16> to vector<128x128xbf16>
    %49 = arith.truncf %46 : vector<8x128xf32> to vector<8x128xbf16>
    %cst_24 = arith.constant dense<0.000000e+00> : vector<8x128xf32>
    %50 = tpu.matmul %49, %48, %cst_24 {dimension_numbers = #tpu.dot_dimension_numbers<[1], [0], [0], [1], [0, 0, 1, 1], [], []>} : vector<8x128xbf16>, vector<128x128xbf16>, vector<8x128xf32> -> vector<8x128xf32>
    %51 = tpu.iota {dimensions = array<i32: 0>} : vector<8x128xi32>
    %c8_i32 = arith.constant 8 : i32
    %c0_i32_25 = arith.constant 0 : i32
    %52 = arith.cmpi eq, %c8_i32, %c0_i32_25 : i32
    %c1_i32_26 = arith.constant 1 : i32
    %53 = arith.select %52, %c1_i32_26, %c8_i32 : i32
    %54 = vector.broadcast %53 : i32 to vector<8x128xi32>
    %55 = arith.remsi %51, %54 : vector<8x128xi32>
    %c0_i32_27 = arith.constant 0 : i32
    %56 = vector.broadcast %c0_i32_27 : i32 to vector<8x128xi32>
    %57 = arith.cmpi ne, %55, %56 : vector<8x128xi32>
    %c0_i32_28 = arith.constant 0 : i32
    %58 = vector.broadcast %c0_i32_28 : i32 to vector<8x128xi32>
    %59 = arith.cmpi slt, %55, %58 : vector<8x128xi32>
    %c0_i32_29 = arith.constant 0 : i32
    %60 = arith.cmpi slt, %53, %c0_i32_29 : i32
    %61 = vector.broadcast %60 : i1 to vector<8x128xi1>
    %62 = vector.broadcast %61 : vector<8x128xi1> to vector<8x128xi1>
    %63 = arith.xori %59, %62 : vector<8x128xi1>
    %64 = arith.andi %63, %57 : vector<8x128xi1>
    %65 = vector.broadcast %53 : i32 to vector<8x128xi32>
    %66 = arith.addi %55, %65 : vector<8x128xi32>
    %67 = arith.select %64, %66, %55 : vector<8x128xi1>, vector<8x128xi32>
    %c0_i32_30 = arith.constant 0 : i32
    %68 = vector.broadcast %c0_i32_30 : i32 to vector<8x128xi32>
    %69 = arith.cmpi sgt, %67, %68 : vector<8x128xi32>
    %c1_i32_31 = arith.constant 1 : i32
    %70 = tpu.dynamic_rotate %50 by %c1_i32_31 dim 0 : vector<8x128xf32>, i32 -> vector<8x128xf32>
    %cst_32 = arith.constant 0.000000e+00 : f32
    %71 = vector.broadcast %cst_32 : f32 to vector<8x128xf32>
    %72 = arith.select %69, %70, %71 : vector<8x128xi1>, vector<8x128xf32>
    %c7_i32 = arith.constant 7 : i32
    %73 = vector.broadcast %c7_i32 : i32 to vector<8x128xi32>
    %74 = arith.cmpi slt, %67, %73 : vector<8x128xi32>
    %c7_i32_33 = arith.constant 7 : i32
    %75 = tpu.dynamic_rotate %50 by %c7_i32_33 dim 0 : vector<8x128xf32>, i32 -> vector<8x128xf32>
    %cst_34 = arith.constant 0.000000e+00 : f32
    %76 = vector.broadcast %cst_34 : f32 to vector<8x128xf32>
    %77 = arith.select %74, %75, %76 : vector<8x128xi1>, vector<8x128xf32>
    %78 = tpu.concatenate %72, %50, %77 in 1 : vector<8x128xf32>, vector<8x128xf32>, vector<8x128xf32> -> vector<8x384xf32>
    %c1 = arith.constant 1 : index
    %c0_35 = arith.constant 0 : index
    %c0_36 = arith.constant 0 : index
    %79 = vector.load %arg2[%c1, %c0_35, %c0_36] : memref<6x384x128xbf16, #tpu.memory_space<vmem>>, vector<1x384x128xbf16>
    %80 = vector.shape_cast %79 : vector<1x384x128xbf16> to vector<384x128xbf16>
    %81 = arith.truncf %78 : vector<8x384xf32> to vector<8x384xbf16>
    %cst_37 = arith.constant dense<0.000000e+00> : vector<8x128xf32>
    %82 = tpu.matmul %81, %80, %cst_37 {dimension_numbers = #tpu.dot_dimension_numbers<[1], [0], [0], [1], [0, 0, 1, 1], [], []>} : vector<8x384xbf16>, vector<384x128xbf16>, vector<8x128xf32> -> vector<8x128xf32>
    %c1_38 = arith.constant 1 : index
    %c0_39 = arith.constant 0 : index
    %c0_40 = arith.constant 0 : index
    %83 = vector.load %arg3[%c1_38, %c0_39, %c0_40] : memref<6x1x128xf32, #tpu.memory_space<vmem>>, vector<1x1x128xf32>
    %84 = vector.shape_cast %83 : vector<1x1x128xf32> to vector<1x128xf32>
    %85 = vector.broadcast %84 : vector<1x128xf32> to vector<8x128xf32>
    %86 = arith.addf %82, %85 : vector<8x128xf32>
    %cst_41 = arith.constant 0.000000e+00 : f32
    %87 = vector.broadcast %cst_41 : f32 to vector<8x128xf32>
    %88 = arith.maximumf %86, %87 : vector<8x128xf32>
    %c7_i32_42 = arith.constant 7 : i32
    %89 = tpu.dynamic_rotate %88 by %c7_i32_42 dim 0 : vector<8x128xf32>, i32 -> vector<8x128xf32>
    %90 = arith.maximumf %88, %89 : vector<8x128xf32>
    %c1_43 = arith.constant 1 : index
    %c0_44 = arith.constant 0 : index
    %c0_45 = arith.constant 0 : index
    %91 = vector.load %arg4[%c1_43, %c0_44, %c0_45] : memref<6x16x16xbf16, #tpu.memory_space<vmem>>, vector<1x4x8xbf16>
    %92 = vector.shape_cast %91 : vector<1x4x8xbf16> to vector<4x8xbf16>
    %93 = arith.truncf %90 : vector<8x128xf32> to vector<8x128xbf16>
    %cst_46 = arith.constant dense<0.000000e+00> : vector<4x128xf32>
    %94 = tpu.matmul %92, %93, %cst_46 {dimension_numbers = #tpu.dot_dimension_numbers<[1], [0], [0], [1], [0, 0, 1, 1], [], []>} : vector<4x8xbf16>, vector<8x128xbf16>, vector<4x128xf32> -> vector<4x128xf32>
    %c120_i32 = arith.constant 120 : i32
    %95 = tpu.dynamic_rotate %94 by %c120_i32 dim 1 : vector<4x128xf32>, i32 -> vector<4x128xf32>
    %96 = arith.maximumf %94, %95 : vector<4x128xf32>
    %c1_47 = arith.constant 1 : index
    %c0_48 = arith.constant 0 : index
    %c0_49 = arith.constant 0 : index
    %97 = vector.load %arg5[%c1_47, %c0_48, %c0_49] : memref<6x128x128xbf16, #tpu.memory_space<vmem>>, vector<1x128x128xbf16>
    %98 = vector.shape_cast %97 : vector<1x128x128xbf16> to vector<128x128xbf16>
    %99 = arith.truncf %96 : vector<4x128xf32> to vector<4x128xbf16>
    %cst_50 = arith.constant dense<0.000000e+00> : vector<4x128xf32>
    %100 = tpu.matmul %99, %98, %cst_50 {dimension_numbers = #tpu.dot_dimension_numbers<[1], [0], [0], [1], [0, 0, 1, 1], [], []>} : vector<4x128xbf16>, vector<128x128xbf16>, vector<4x128xf32> -> vector<4x128xf32>
    %101 = tpu.iota {dimensions = array<i32: 0>} : vector<4x128xi32>
    %c4_i32 = arith.constant 4 : i32
    %c0_i32_51 = arith.constant 0 : i32
    %102 = arith.cmpi eq, %c4_i32, %c0_i32_51 : i32
    %c1_i32_52 = arith.constant 1 : i32
    %103 = arith.select %102, %c1_i32_52, %c4_i32 : i32
    %104 = vector.broadcast %103 : i32 to vector<4x128xi32>
    %105 = arith.remsi %101, %104 : vector<4x128xi32>
    %c0_i32_53 = arith.constant 0 : i32
    %106 = vector.broadcast %c0_i32_53 : i32 to vector<4x128xi32>
    %107 = arith.cmpi ne, %105, %106 : vector<4x128xi32>
    %c0_i32_54 = arith.constant 0 : i32
    %108 = vector.broadcast %c0_i32_54 : i32 to vector<4x128xi32>
    %109 = arith.cmpi slt, %105, %108 : vector<4x128xi32>
    %c0_i32_55 = arith.constant 0 : i32
    %110 = arith.cmpi slt, %103, %c0_i32_55 : i32
    %111 = vector.broadcast %110 : i1 to vector<4x128xi1>
    %112 = vector.broadcast %111 : vector<4x128xi1> to vector<4x128xi1>
    %113 = arith.xori %109, %112 : vector<4x128xi1>
    %114 = arith.andi %113, %107 : vector<4x128xi1>
    %115 = vector.broadcast %103 : i32 to vector<4x128xi32>
    %116 = arith.addi %105, %115 : vector<4x128xi32>
    %117 = arith.select %114, %116, %105 : vector<4x128xi1>, vector<4x128xi32>
    %c0_i32_56 = arith.constant 0 : i32
    %118 = vector.broadcast %c0_i32_56 : i32 to vector<4x128xi32>
    %119 = arith.cmpi sgt, %117, %118 : vector<4x128xi32>
    %c1_i32_57 = arith.constant 1 : i32
    %120 = tpu.dynamic_rotate %100 by %c1_i32_57 dim 0 : vector<4x128xf32>, i32 -> vector<4x128xf32>
    %cst_58 = arith.constant 0.000000e+00 : f32
    %121 = vector.broadcast %cst_58 : f32 to vector<4x128xf32>
    %122 = arith.select %119, %120, %121 : vector<4x128xi1>, vector<4x128xf32>
    %c3_i32 = arith.constant 3 : i32
    %123 = vector.broadcast %c3_i32 : i32 to vector<4x128xi32>
    %124 = arith.cmpi slt, %117, %123 : vector<4x128xi32>
    %c3_i32_59 = arith.constant 3 : i32
    %125 = tpu.dynamic_rotate %100 by %c3_i32_59 dim 0 : vector<4x128xf32>, i32 -> vector<4x128xf32>
    %cst_60 = arith.constant 0.000000e+00 : f32
    %126 = vector.broadcast %cst_60 : f32 to vector<4x128xf32>
    %127 = arith.select %124, %125, %126 : vector<4x128xi1>, vector<4x128xf32>
    %128 = tpu.concatenate %122, %100, %127 in 1 : vector<4x128xf32>, vector<4x128xf32>, vector<4x128xf32> -> vector<4x384xf32>
    %c2 = arith.constant 2 : index
    %c0_61 = arith.constant 0 : index
    %c0_62 = arith.constant 0 : index
    %129 = vector.load %arg2[%c2, %c0_61, %c0_62] : memref<6x384x128xbf16, #tpu.memory_space<vmem>>, vector<1x384x128xbf16>
    %130 = vector.shape_cast %129 : vector<1x384x128xbf16> to vector<384x128xbf16>
    %131 = arith.truncf %128 : vector<4x384xf32> to vector<4x384xbf16>
    %cst_63 = arith.constant dense<0.000000e+00> : vector<4x128xf32>
    %132 = tpu.matmul %131, %130, %cst_63 {dimension_numbers = #tpu.dot_dimension_numbers<[1], [0], [0], [1], [0, 0, 1, 1], [], []>} : vector<4x384xbf16>, vector<384x128xbf16>, vector<4x128xf32> -> vector<4x128xf32>
    %c2_64 = arith.constant 2 : index
    %c0_65 = arith.constant 0 : index
    %c0_66 = arith.constant 0 : index
    %133 = vector.load %arg3[%c2_64, %c0_65, %c0_66] : memref<6x1x128xf32, #tpu.memory_space<vmem>>, vector<1x1x128xf32>
    %134 = vector.shape_cast %133 : vector<1x1x128xf32> to vector<1x128xf32>
    %135 = vector.broadcast %134 : vector<1x128xf32> to vector<4x128xf32>
    %136 = arith.addf %132, %135 : vector<4x128xf32>
    %cst_67 = arith.constant 0.000000e+00 : f32
    %137 = vector.broadcast %cst_67 : f32 to vector<4x128xf32>
    %138 = arith.maximumf %136, %137 : vector<4x128xf32>
    %c3_i32_68 = arith.constant 3 : i32
    %139 = tpu.dynamic_rotate %138 by %c3_i32_68 dim 0 : vector<4x128xf32>, i32 -> vector<4x128xf32>
    %140 = arith.maximumf %138, %139 : vector<4x128xf32>
    %c2_69 = arith.constant 2 : index
    %c0_70 = arith.constant 0 : index
    %c0_71 = arith.constant 0 : index
    %141 = vector.load %arg4[%c2_69, %c0_70, %c0_71] : memref<6x16x16xbf16, #tpu.memory_space<vmem>>, vector<1x2x4xbf16>
    %142 = vector.shape_cast %141 : vector<1x2x4xbf16> to vector<2x4xbf16>
    %143 = arith.truncf %140 : vector<4x128xf32> to vector<4x128xbf16>
    %cst_72 = arith.constant dense<0.000000e+00> : vector<2x128xf32>
    %144 = tpu.matmul %142, %143, %cst_72 {dimension_numbers = #tpu.dot_dimension_numbers<[1], [0], [0], [1], [0, 0, 1, 1], [], []>} : vector<2x4xbf16>, vector<4x128xbf16>, vector<2x128xf32> -> vector<2x128xf32>
    %c112_i32 = arith.constant 112 : i32
    %145 = tpu.dynamic_rotate %144 by %c112_i32 dim 1 : vector<2x128xf32>, i32 -> vector<2x128xf32>
    %146 = arith.maximumf %144, %145 : vector<2x128xf32>
    %c2_73 = arith.constant 2 : index
    %c0_74 = arith.constant 0 : index
    %c0_75 = arith.constant 0 : index
    %147 = vector.load %arg5[%c2_73, %c0_74, %c0_75] : memref<6x128x128xbf16, #tpu.memory_space<vmem>>, vector<1x128x128xbf16>
    %148 = vector.shape_cast %147 : vector<1x128x128xbf16> to vector<128x128xbf16>
    %149 = arith.truncf %146 : vector<2x128xf32> to vector<2x128xbf16>
    %cst_76 = arith.constant dense<0.000000e+00> : vector<2x128xf32>
    %150 = tpu.matmul %149, %148, %cst_76 {dimension_numbers = #tpu.dot_dimension_numbers<[1], [0], [0], [1], [0, 0, 1, 1], [], []>} : vector<2x128xbf16>, vector<128x128xbf16>, vector<2x128xf32> -> vector<2x128xf32>
    %151 = tpu.iota {dimensions = array<i32: 0>} : vector<2x128xi32>
    %c2_i32 = arith.constant 2 : i32
    %c0_i32_77 = arith.constant 0 : i32
    %152 = arith.cmpi eq, %c2_i32, %c0_i32_77 : i32
    %c1_i32_78 = arith.constant 1 : i32
    %153 = arith.select %152, %c1_i32_78, %c2_i32 : i32
    %154 = vector.broadcast %153 : i32 to vector<2x128xi32>
    %155 = arith.remsi %151, %154 : vector<2x128xi32>
    %c0_i32_79 = arith.constant 0 : i32
    %156 = vector.broadcast %c0_i32_79 : i32 to vector<2x128xi32>
    %157 = arith.cmpi ne, %155, %156 : vector<2x128xi32>
    %c0_i32_80 = arith.constant 0 : i32
    %158 = vector.broadcast %c0_i32_80 : i32 to vector<2x128xi32>
    %159 = arith.cmpi slt, %155, %158 : vector<2x128xi32>
    %c0_i32_81 = arith.constant 0 : i32
    %160 = arith.cmpi slt, %153, %c0_i32_81 : i32
    %161 = vector.broadcast %160 : i1 to vector<2x128xi1>
    %162 = vector.broadcast %161 : vector<2x128xi1> to vector<2x128xi1>
    %163 = arith.xori %159, %162 : vector<2x128xi1>
    %164 = arith.andi %163, %157 : vector<2x128xi1>
    %165 = vector.broadcast %153 : i32 to vector<2x128xi32>
    %166 = arith.addi %155, %165 : vector<2x128xi32>
    %167 = arith.select %164, %166, %155 : vector<2x128xi1>, vector<2x128xi32>
    %c0_i32_82 = arith.constant 0 : i32
    %168 = vector.broadcast %c0_i32_82 : i32 to vector<2x128xi32>
    %169 = arith.cmpi sgt, %167, %168 : vector<2x128xi32>
    %c1_i32_83 = arith.constant 1 : i32
    %170 = tpu.dynamic_rotate %150 by %c1_i32_83 dim 0 : vector<2x128xf32>, i32 -> vector<2x128xf32>
    %cst_84 = arith.constant 0.000000e+00 : f32
    %171 = vector.broadcast %cst_84 : f32 to vector<2x128xf32>
    %172 = arith.select %169, %170, %171 : vector<2x128xi1>, vector<2x128xf32>
    %c1_i32_85 = arith.constant 1 : i32
    %173 = vector.broadcast %c1_i32_85 : i32 to vector<2x128xi32>
    %174 = arith.cmpi slt, %167, %173 : vector<2x128xi32>
    %c1_i32_86 = arith.constant 1 : i32
    %175 = tpu.dynamic_rotate %150 by %c1_i32_86 dim 0 : vector<2x128xf32>, i32 -> vector<2x128xf32>
    %cst_87 = arith.constant 0.000000e+00 : f32
    %176 = vector.broadcast %cst_87 : f32 to vector<2x128xf32>
    %177 = arith.select %174, %175, %176 : vector<2x128xi1>, vector<2x128xf32>
    %178 = tpu.concatenate %172, %150, %177 in 1 : vector<2x128xf32>, vector<2x128xf32>, vector<2x128xf32> -> vector<2x384xf32>
    %c3 = arith.constant 3 : index
    %c0_88 = arith.constant 0 : index
    %c0_89 = arith.constant 0 : index
    %179 = vector.load %arg2[%c3, %c0_88, %c0_89] : memref<6x384x128xbf16, #tpu.memory_space<vmem>>, vector<1x384x128xbf16>
    %180 = vector.shape_cast %179 : vector<1x384x128xbf16> to vector<384x128xbf16>
    %181 = arith.truncf %178 : vector<2x384xf32> to vector<2x384xbf16>
    %cst_90 = arith.constant dense<0.000000e+00> : vector<2x128xf32>
    %182 = tpu.matmul %181, %180, %cst_90 {dimension_numbers = #tpu.dot_dimension_numbers<[1], [0], [0], [1], [0, 0, 1, 1], [], []>} : vector<2x384xbf16>, vector<384x128xbf16>, vector<2x128xf32> -> vector<2x128xf32>
    %c3_91 = arith.constant 3 : index
    %c0_92 = arith.constant 0 : index
    %c0_93 = arith.constant 0 : index
    %183 = vector.load %arg3[%c3_91, %c0_92, %c0_93] : memref<6x1x128xf32, #tpu.memory_space<vmem>>, vector<1x1x128xf32>
    %184 = vector.shape_cast %183 : vector<1x1x128xf32> to vector<1x128xf32>
    %185 = vector.broadcast %184 : vector<1x128xf32> to vector<2x128xf32>
    %186 = arith.addf %182, %185 : vector<2x128xf32>
    %cst_94 = arith.constant 0.000000e+00 : f32
    %187 = vector.broadcast %cst_94 : f32 to vector<2x128xf32>
    %188 = arith.maximumf %186, %187 : vector<2x128xf32>
    %c3_95 = arith.constant 3 : index
    %c0_96 = arith.constant 0 : index
    %c0_97 = arith.constant 0 : index
    %189 = vector.load %arg4[%c3_95, %c0_96, %c0_97] : memref<6x16x16xbf16, #tpu.memory_space<vmem>>, vector<1x4x2xbf16>
    %190 = vector.shape_cast %189 : vector<1x4x2xbf16> to vector<4x2xbf16>
    %191 = arith.truncf %188 : vector<2x128xf32> to vector<2x128xbf16>
    %cst_98 = arith.constant dense<0.000000e+00> : vector<4x128xf32>
    %192 = tpu.matmul %190, %191, %cst_98 {dimension_numbers = #tpu.dot_dimension_numbers<[1], [0], [0], [1], [0, 0, 1, 1], [], []>} : vector<4x2xbf16>, vector<2x128xbf16>, vector<4x128xf32> -> vector<4x128xf32>
    %c3_99 = arith.constant 3 : index
    %c0_100 = arith.constant 0 : index
    %c0_101 = arith.constant 0 : index
    %193 = vector.load %arg5[%c3_99, %c0_100, %c0_101] : memref<6x128x128xbf16, #tpu.memory_space<vmem>>, vector<1x128x128xbf16>
    %194 = vector.shape_cast %193 : vector<1x128x128xbf16> to vector<128x128xbf16>
    %195 = arith.truncf %192 : vector<4x128xf32> to vector<4x128xbf16>
    %cst_102 = arith.constant dense<0.000000e+00> : vector<4x128xf32>
    %196 = tpu.matmul %195, %194, %cst_102 {dimension_numbers = #tpu.dot_dimension_numbers<[1], [0], [0], [1], [0, 0, 1, 1], [], []>} : vector<4x128xbf16>, vector<128x128xbf16>, vector<4x128xf32> -> vector<4x128xf32>
    %c0_i32_103 = arith.constant 0 : i32
    %197 = vector.broadcast %c0_i32_103 : i32 to vector<4x128xi32>
    %198 = arith.cmpi sgt, %117, %197 : vector<4x128xi32>
    %c1_i32_104 = arith.constant 1 : i32
    %199 = tpu.dynamic_rotate %196 by %c1_i32_104 dim 0 : vector<4x128xf32>, i32 -> vector<4x128xf32>
    %cst_105 = arith.constant 0.000000e+00 : f32
    %200 = vector.broadcast %cst_105 : f32 to vector<4x128xf32>
    %201 = arith.select %198, %199, %200 : vector<4x128xi1>, vector<4x128xf32>
    %c3_i32_106 = arith.constant 3 : i32
    %202 = vector.broadcast %c3_i32_106 : i32 to vector<4x128xi32>
    %203 = arith.cmpi slt, %117, %202 : vector<4x128xi32>
    %c3_i32_107 = arith.constant 3 : i32
    %204 = tpu.dynamic_rotate %196 by %c3_i32_107 dim 0 : vector<4x128xf32>, i32 -> vector<4x128xf32>
    %cst_108 = arith.constant 0.000000e+00 : f32
    %205 = vector.broadcast %cst_108 : f32 to vector<4x128xf32>
    %206 = arith.select %203, %204, %205 : vector<4x128xi1>, vector<4x128xf32>
    %207 = tpu.concatenate %201, %196, %206 in 1 : vector<4x128xf32>, vector<4x128xf32>, vector<4x128xf32> -> vector<4x384xf32>
    %c4 = arith.constant 4 : index
    %c0_109 = arith.constant 0 : index
    %c0_110 = arith.constant 0 : index
    %208 = vector.load %arg2[%c4, %c0_109, %c0_110] : memref<6x384x128xbf16, #tpu.memory_space<vmem>>, vector<1x384x128xbf16>
    %209 = vector.shape_cast %208 : vector<1x384x128xbf16> to vector<384x128xbf16>
    %210 = arith.truncf %207 : vector<4x384xf32> to vector<4x384xbf16>
    %cst_111 = arith.constant dense<0.000000e+00> : vector<4x128xf32>
    %211 = tpu.matmul %210, %209, %cst_111 {dimension_numbers = #tpu.dot_dimension_numbers<[1], [0], [0], [1], [0, 0, 1, 1], [], []>} : vector<4x384xbf16>, vector<384x128xbf16>, vector<4x128xf32> -> vector<4x128xf32>
    %c4_112 = arith.constant 4 : index
    %c0_113 = arith.constant 0 : index
    %c0_114 = arith.constant 0 : index
    %212 = vector.load %arg3[%c4_112, %c0_113, %c0_114] : memref<6x1x128xf32, #tpu.memory_space<vmem>>, vector<1x1x128xf32>
    %213 = vector.shape_cast %212 : vector<1x1x128xf32> to vector<1x128xf32>
    %214 = vector.broadcast %213 : vector<1x128xf32> to vector<4x128xf32>
    %215 = arith.addf %211, %214 : vector<4x128xf32>
    %cst_115 = arith.constant 0.000000e+00 : f32
    %216 = vector.broadcast %cst_115 : f32 to vector<4x128xf32>
    %217 = arith.maximumf %215, %216 : vector<4x128xf32>
    %c4_116 = arith.constant 4 : index
    %c0_117 = arith.constant 0 : index
    %c0_118 = arith.constant 0 : index
    %218 = vector.load %arg4[%c4_116, %c0_117, %c0_118] : memref<6x16x16xbf16, #tpu.memory_space<vmem>>, vector<1x8x4xbf16>
    %219 = vector.shape_cast %218 : vector<1x8x4xbf16> to vector<8x4xbf16>
    %220 = arith.truncf %217 : vector<4x128xf32> to vector<4x128xbf16>
    %cst_119 = arith.constant dense<0.000000e+00> : vector<8x128xf32>
    %221 = tpu.matmul %219, %220, %cst_119 {dimension_numbers = #tpu.dot_dimension_numbers<[1], [0], [0], [1], [0, 0, 1, 1], [], []>} : vector<8x4xbf16>, vector<4x128xbf16>, vector<8x128xf32> -> vector<8x128xf32>
    %c4_120 = arith.constant 4 : index
    %c0_121 = arith.constant 0 : index
    %c0_122 = arith.constant 0 : index
    %222 = vector.load %arg5[%c4_120, %c0_121, %c0_122] : memref<6x128x128xbf16, #tpu.memory_space<vmem>>, vector<1x128x128xbf16>
    %223 = vector.shape_cast %222 : vector<1x128x128xbf16> to vector<128x128xbf16>
    %224 = arith.truncf %221 : vector<8x128xf32> to vector<8x128xbf16>
    %cst_123 = arith.constant dense<0.000000e+00> : vector<8x128xf32>
    %225 = tpu.matmul %224, %223, %cst_123 {dimension_numbers = #tpu.dot_dimension_numbers<[1], [0], [0], [1], [0, 0, 1, 1], [], []>} : vector<8x128xbf16>, vector<128x128xbf16>, vector<8x128xf32> -> vector<8x128xf32>
    %c0_i32_124 = arith.constant 0 : i32
    %226 = vector.broadcast %c0_i32_124 : i32 to vector<8x128xi32>
    %227 = arith.cmpi sgt, %67, %226 : vector<8x128xi32>
    %c1_i32_125 = arith.constant 1 : i32
    %228 = tpu.dynamic_rotate %225 by %c1_i32_125 dim 0 : vector<8x128xf32>, i32 -> vector<8x128xf32>
    %cst_126 = arith.constant 0.000000e+00 : f32
    %229 = vector.broadcast %cst_126 : f32 to vector<8x128xf32>
    %230 = arith.select %227, %228, %229 : vector<8x128xi1>, vector<8x128xf32>
    %c7_i32_127 = arith.constant 7 : i32
    %231 = vector.broadcast %c7_i32_127 : i32 to vector<8x128xi32>
    %232 = arith.cmpi slt, %67, %231 : vector<8x128xi32>
    %c7_i32_128 = arith.constant 7 : i32
    %233 = tpu.dynamic_rotate %225 by %c7_i32_128 dim 0 : vector<8x128xf32>, i32 -> vector<8x128xf32>
    %cst_129 = arith.constant 0.000000e+00 : f32
    %234 = vector.broadcast %cst_129 : f32 to vector<8x128xf32>
    %235 = arith.select %232, %233, %234 : vector<8x128xi1>, vector<8x128xf32>
    %236 = tpu.concatenate %230, %225, %235 in 1 : vector<8x128xf32>, vector<8x128xf32>, vector<8x128xf32> -> vector<8x384xf32>
    %c5 = arith.constant 5 : index
    %c0_130 = arith.constant 0 : index
    %c0_131 = arith.constant 0 : index
    %237 = vector.load %arg2[%c5, %c0_130, %c0_131] : memref<6x384x128xbf16, #tpu.memory_space<vmem>>, vector<1x384x128xbf16>
    %238 = vector.shape_cast %237 : vector<1x384x128xbf16> to vector<384x128xbf16>
    %239 = arith.truncf %236 : vector<8x384xf32> to vector<8x384xbf16>
    %cst_132 = arith.constant dense<0.000000e+00> : vector<8x128xf32>
    %240 = tpu.matmul %239, %238, %cst_132 {dimension_numbers = #tpu.dot_dimension_numbers<[1], [0], [0], [1], [0, 0, 1, 1], [], []>} : vector<8x384xbf16>, vector<384x128xbf16>, vector<8x128xf32> -> vector<8x128xf32>
    %c5_133 = arith.constant 5 : index
    %c0_134 = arith.constant 0 : index
    %c0_135 = arith.constant 0 : index
    %241 = vector.load %arg3[%c5_133, %c0_134, %c0_135] : memref<6x1x128xf32, #tpu.memory_space<vmem>>, vector<1x1x128xf32>
    %242 = vector.shape_cast %241 : vector<1x1x128xf32> to vector<1x128xf32>
    %243 = vector.broadcast %242 : vector<1x128xf32> to vector<8x128xf32>
    %244 = arith.addf %240, %243 : vector<8x128xf32>
    %cst_136 = arith.constant 0.000000e+00 : f32
    %245 = vector.broadcast %cst_136 : f32 to vector<8x128xf32>
    %246 = arith.maximumf %244, %245 : vector<8x128xf32>
    %c5_137 = arith.constant 5 : index
    %c0_138 = arith.constant 0 : index
    %c0_139 = arith.constant 0 : index
    %247 = vector.load %arg4[%c5_137, %c0_138, %c0_139] : memref<6x16x16xbf16, #tpu.memory_space<vmem>>, vector<1x16x8xbf16>
    %248 = vector.shape_cast %247 : vector<1x16x8xbf16> to vector<16x8xbf16>
    %249 = arith.truncf %246 : vector<8x128xf32> to vector<8x128xbf16>
    %cst_140 = arith.constant dense<0.000000e+00> : vector<16x128xf32>
    %250 = tpu.matmul %248, %249, %cst_140 {dimension_numbers = #tpu.dot_dimension_numbers<[1], [0], [0], [1], [0, 0, 1, 1], [], []>} : vector<16x8xbf16>, vector<8x128xbf16>, vector<16x128xf32> -> vector<16x128xf32>
    %c5_141 = arith.constant 5 : index
    %c0_142 = arith.constant 0 : index
    %c0_143 = arith.constant 0 : index
    %251 = vector.load %arg5[%c5_141, %c0_142, %c0_143] : memref<6x128x128xbf16, #tpu.memory_space<vmem>>, vector<1x128x128xbf16>
    %252 = vector.shape_cast %251 : vector<1x128x128xbf16> to vector<128x128xbf16>
    %253 = arith.truncf %250 : vector<16x128xf32> to vector<16x128xbf16>
    %cst_144 = arith.constant dense<0.000000e+00> : vector<16x128xf32>
    %254 = tpu.matmul %253, %252, %cst_144 {dimension_numbers = #tpu.dot_dimension_numbers<[1], [0], [0], [1], [0, 0, 1, 1], [], []>} : vector<16x128xbf16>, vector<128x128xbf16>, vector<16x128xf32> -> vector<16x128xf32>
    %c0_145 = arith.constant 0 : index
    %c0_146 = arith.constant 0 : index
    %255 = vector.load %arg6[%c0_145, %c0_146] : memref<16x128xf32, #tpu.memory_space<vmem>>, vector<16x128xf32>
    tpu.vector_store %arg6[%c0_145, %c0_146], %254 {strides = array<i32>} : memref<16x128xf32, #tpu.memory_space<vmem>>, vector<16x128xf32>,
    return
  }
  func.func @transform_0(%arg0: i32) -> (i32, i32) {
    %c0_i32 = arith.constant 0 : i32
    %c0_i32_0 = arith.constant 0 : i32
    return %arg0, %c0_i32 : i32, i32
  }
  func.func @transform_1(%arg0: i32) -> (i32, i32, i32) {
    %c0_i32 = arith.constant 0 : i32
    %c0_i32_0 = arith.constant 0 : i32
    %c0_i32_1 = arith.constant 0 : i32
    %c0_i32_2 = arith.constant 0 : i32
    return %c0_i32, %c0_i32_0, %c0_i32_1 : i32, i32, i32
  }
  func.func @transform_2(%arg0: i32) -> (i32, i32, i32) {
    %c0_i32 = arith.constant 0 : i32
    %c0_i32_0 = arith.constant 0 : i32
    %c0_i32_1 = arith.constant 0 : i32
    %c0_i32_2 = arith.constant 0 : i32
    return %c0_i32, %c0_i32_0, %c0_i32_1 : i32, i32, i32
  }
  func.func @transform_3(%arg0: i32) -> (i32, i32, i32) {
    %c0_i32 = arith.constant 0 : i32
    %c0_i32_0 = arith.constant 0 : i32
    %c0_i32_1 = arith.constant 0 : i32
    %c0_i32_2 = arith.constant 0 : i32
    return %c0_i32, %c0_i32_0, %c0_i32_1 : i32, i32, i32
  }
  func.func @transform_4(%arg0: i32) -> (i32, i32, i32) {
    %c0_i32 = arith.constant 0 : i32
    %c0_i32_0 = arith.constant 0 : i32
    %c0_i32_1 = arith.constant 0 : i32
    %c0_i32_2 = arith.constant 0 : i32
    return %c0_i32, %c0_i32_0, %c0_i32_1 : i32, i32, i32
  }
  func.func @transform_5(%arg0: i32) -> (i32, i32) {
    %c0_i32 = arith.constant 0 : i32
    %c0_i32_0 = arith.constant 0 : i32
    return %arg0, %c0_i32 : i32, i32
  }
}

</mosaic_0001>

<bundles_post_ra>
// kernel: forward.1
= control target key start
LH: loop header
LB: loop body
LE: loop exit
PB: predicated region body
PF: predicated region fallthrough
CT: control target
= control target key end

     0   :  { %10 = vsyncpa [#allocation3], 0  ;;  %s4641_s0 = inlined_call_operand.vmem [shape: f32[32,128], index: 0, kind: input, shape index: {}]   ;;  %s4642_s1 = inlined_call_operand.hbm [shape: bf16[6,384,128], index: 1, kind: input, shape index: {}]   ;;  %s4643_s2 = inlined_call_operand.vmem [shape: f32[6,1,128], index: 2, kind: input, shape index: {}]   ;;  %s4644_s3 = inlined_call_operand.vmem [shape: bf16[6,16,16], index: 3, kind: input, shape index: {}]   ;;  %s4645_s4 = inlined_call_operand.hbm [shape: bf16[6,128,128], index: 4, kind: input, shape index: {}]   ;;  %s4646_s5 = inlined_call_operand.vmem [shape: f32[32,128], index: 5, kind: output, shape index: {}]  }
   0x1   :  { %11 = vsyncpa [#allocation5], 0  ;;  %s4278_s18 = smov 0  }
   0x2 LB: > { %s3145_s19 = sadd.s32 4294967295, %s4236_s18   ;;  %p3147_p0 = scmp.ge.s32.totalorder %s4236_s18, 1  ;;  %s4236_s18 = sphi %s4278_s18, %s17_s18  }
   0x3   : > { %p158_p1 = scmp.lt.s32.totalorder %s4236_s18, 3  ;;  %s4238_s20 = smov [#allocation2]  }
   0x4   : > { %s170_s21 = sshll.u32 %s4238_s20, 4  ;;  %p4292_p3 = scmp.eq.s32.totalorder %s3145_s19, 0  ;;  %s171_s21 = int_to_ptr.vmem [resolvable:$true] %s170_s21 }
   0x5   : > { %p4286_p2 = pnand %p3147_p0, %p158_p1  ;;  %s4239_s24 = smov [#allocation4]  }
   0x6   : > { %s189_s25 = sshll.u32 %s4239_s24, 4  ;;  %s4181_s27 = scalar_lea.vmem %s171_s21, 18432  ;;  %s190_s25 = int_to_ptr.vmem [resolvable:$true] %s189_s25 }
   0x7   : > { %p3948_p4 = pneg %p4286_p2  ;;  %p4182_p7 = scmp.ne.s32.totalorder %s171_s21, %s4181_s27 }
   0x8   : > { %p4189_p10 = scmp.lt.s32.totalorder %s171_s21, %s171_s21  ;;  %p4190_p11 = scmp.lt.s32.totalorder %s4181_s27, %s4181_s27 }
   0x9   : > { %p4300_p5 = pnand %p4292_p3, %p3948_p4 }
   0xa   : > { %p4191_p12 = por %p4190_p11, %p4189_p10 }
   0xb   : > { %p4172_p6 = pneg %p4300_p5 }
   0xd   : > { %p4184_p8 = pnand %p4182_p7, %p4172_p6 }
   0xf   : > { %p4185_p9 = pneg %p4184_p8 }
  0x11   : > { %p4192_p13 = pnand %p4191_p12, %p4185_p9 }
  0x13   : > { %4195 = shalt.err (!%p4192_p13)
}
  0x14   : > { %s4240_s28 = smov 64   ;;  %s4241_s29 = smov 4  }
  0x15   : > { %3951 = dma.hbm_to_vmem [thread:$0]  (!%p4300_p5), %s4642_s1, 18432, %s171_s21, [#allocation3], %s4240_s28, %s4240_s28, %s4241_s29  }
  0x16   : > { %s4207_s7 = scalar_lea.vmem %s190_s25, 6144  ;;  %p4215_p7 = scmp.lt.s32.totalorder %s190_s25, %s190_s25 }
  0x17   : > { %p4208_p0 = scmp.ne.s32.totalorder %s190_s25, %s4207_s7  ;;  %p4216_p8 = scmp.lt.s32.totalorder %s4207_s7, %s4207_s7 }
  0x19   : > { %p4210_p1 = pnand %p4208_p0, %p4172_p6  ;;  %p4217_p10 = por %p4216_p8, %p4215_p7 }
  0x1b   : > { %p4211_p4 = pneg %p4210_p1 }
  0x1d   : > { %p4218_p9 = pnand %p4217_p10, %p4211_p4 }
  0x1f   : > { %4221 = shalt.err (!%p4218_p9)
}
  0x20   : > { %3954 = dma.hbm_to_vmem [thread:$0]  (!%p4300_p5), %s4645_s4, 6144, %s190_s25, [#allocation5], %s4240_s28, %s4240_s28, %s4241_s29  }
  0x21   : > { %214 = sbr.rel (%p4286_p2) target bundleno = 4078 (0xfee), region = 40 }
  0x26   : > { %4227 = dma.done.wait (%p4292_p3), [#allocation3], 18432  }
  0x27   : > { %4229 = vsyncadd (%p4292_p3), [#allocation3], 4294948864 }
  0x28   : > { %4231 = dma.done.wait (%p4292_p3), [#allocation5], 6144  }
  0x29   : > { %4233 = vsyncadd (%p4292_p3), [#allocation5], 4294961152  ;;  %v4242_v0 = vmov 0.0   ;;  %vm4243_vm0 = vmmov 0   ;;  %v3977_v1 = vld [vmem:[#allocation2 + $0x78] sm:$0xff]   ;;  %v3980_v4 = vld [vmem:[#allocation2 + $0x70] sm:$0xff]   ;;  %v261_v8 = vlaneseq }
  0x2a   : > { %3664 = vmatprep.subr.bf16.mxu1 %v4242_v0  ;;  %3680 = vmatprep.mubr.msk.bf16.mxu1 %vm4243_vm0, %v4242_v0  ;;  %v3978_v2 = vld [vmem:[#allocation2 + $0x38] sm:$0xff]   ;;  %v3981_v5 = vld [vmem:[#allocation2 + $0x30] sm:$0xff]   ;;  %v3983_v7 = vld [vmem:[#allocation2 + $0x68] sm:$0xff]   ;;  %s3154_s10 = sshll.u32 %s3145_s19, 1  ;;  %vm4244_vm4 = vmmov 1   ;;  %vm600_vm8 = vcmask 130048  }
  0x2b   : > { %3412 = vmatprep.subr.bf16.mxu0 %v3977_v1  ;;  %v3979_v3 = vld [vmem:[#allocation2 + $0xb8] sm:$0xff]   ;;  %v3982_v6 = vld [vmem:[#allocation2 + $0xb0] sm:$0xff]   ;;  %v3984_v9 = vld [vmem:[#allocation2 + $0x28] sm:$0xff]   ;;  %p247_p2 = scmp.lt.s32.totalorder %s3154_s10, 3  ;;  %v4339_v13 = vshrl.u32 %v261_v8, 7  ;;  %s4245_s20 = smov 124  }
  0x2c   : > { %3413 = vmatpush3.bf16.msra.mxu0 %v3978_v2  ;;  %3665 = vmatpush3.bf16.msra.mxu1 %v3979_v3  ;;  %v3985_v10 = vld [vmem:[#allocation2 + $0xa8] sm:$0xff]   ;;  %v3986_v11 = vld [vmem:[#allocation2 + $0x60] sm:$0xff]   ;;  %v3989_v15 = vld [vmem:[#allocation2 + $0x58] sm:$0xff]   ;;  %vm4648_vm13 = vcmask 1043456   ;;  %vm4647_vm14 = vcmask 64512   ;;  %s4246_s25 = smov 120  }
  0x2d   : > { %3414 = vmatprep.subr.bf16.mxu0 %v3980_v4  ;;  %3666 = vmatprep.subr.bf16.mxu1 %v4242_v0  ;;  %v3987_v12 = vld [vmem:[#allocation2 + $0x20] sm:$0xff]   ;;  %s4671_s10 = smov (!%p247_p2, %s3154_s10), 3  ;;  %v3990_v16 = vld [vmem:[#allocation2 + $0x18] sm:$0xff]   ;;  %v263_v17 = vadd.s32 8, %v4339_v13  ;;  %v3992_v19 = vld [vmem:[#allocation2 + $0x50] sm:$0xff]   ;;  %v268_v20 = vand.u32 15, %v4339_v13 }
  0x2e   : > { %v3988_v14 = vld [vmem:[#allocation2 + $0xa0] sm:$0xff]   ;;  %v3991_v18 = vld [vmem:[#allocation2 + $0x98] sm:$0xff]   ;;  %s3155_s11 = sshll.u32 %s4671_s10, 3  ;;  %v3993_v21 = vld [vmem:[#allocation2 + $0x10] sm:$0xff]   ;;  %vm292_vm3 = vcmp.lt.s32.totalorder %v4339_v13, 1  ;;  %vm301_vm6 = vcmp.lt.s32.totalorder %v4339_v13, 7 }
  0x2f   : > { %v275_v22 = vand.u32 15, %v263_v17  ;;  %v3994_v23 = vld [vmem:[#allocation2 + $0x90] sm:$0xff]   ;;  %v3995_v24 = vld [vmem:[#allocation2 + $0x48] sm:$0xff]   ;;  %s250_s14 = scalar_lea.vmem %s4641_s0, %s3155_s11  ;;  %vm288_vm1 = vcmp.gt.s32.totalorder %v268_v20, 0  ;;  %v3998_v28 = vld [vmem:[#allocation2 + $0x40] sm:$0xff]   ;;  %vm1230_vm15 = vcmask 1047556   ;;  %s256_s23 = scalar_lea.vmem %s4646_s5, %s3155_s11 }
  0x30   : > { %3415 = vmatpush3.bf16.msra.mxu0 %v3981_v5  ;;  %3667 = vmatpush3.bf16.msra.mxu1 %v3982_v6  ;;  %v3996_v25 = vld [vmem:[#allocation2 + $0x8] sm:$0xff]   ;;  %v259_v29 = vld [vmem:[%s250_s14] sm:$0xff]  ;;  %vm4359_vm5 = vmpackc.low %vm4244_vm4, %vm288_vm1  ;;  %s4247_s30 = smov 112  }
  0x31   : > { %3416 = vmatprep.subr.bf16.mxu0 %v3983_v7  ;;  %3668 = vmatprep.subr.bf16.mxu1 %v4242_v0  ;;  %v3997_v26 = vld [vmem:[#allocation2 + $0x88] sm:$0xff]   ;;  %vm4354_vm2 = vcmp.lt.s32.totalorder %v275_v22, 15  ;;  %v3999_v32 = vld [vmem:[#allocation2] sm:$0xff]   ;;  %v290_v33 = vrot.slane %v259_v29, 7  ;;  %v299_v35 = vrot.slane %v259_v29, 1  ;;  %v4001_v8 = vld [vmem:[#allocation4 + $0x38] sm:$0xff]  }
  0x32   : > { %v260_v30 = vld [vmem:[%s250_s14 + $0x8] sm:$0xff]  ;;  %vm4367_vm7 = vmpackc.low %vm4354_vm2, %vm4244_vm4  ;;  %v4000_v38 = vld [vmem:[#allocation2 + $0x80] sm:$0xff]  }
  0x33   : > { %v291_v34 = vrot.slane %v260_v30, 7  ;;  %v300_v36 = vrot.slane %v260_v30, 1  ;;  %v355_v39 = vpack.c.bf16 %v260_v30, %v259_v29  ;;  %v3158_v48 = vld [vmem:[%s4643_s2] ss:$0 sm:$0xff]  ;;  %v4009_v17 = vld [vmem:[#allocation2 + $0x138] sm:$0xff]   ;;  %v4013_v20 = vld [vmem:[#allocation2 + $0xf0] sm:$0xff]  }
  0x34   : > { %3417 = vmatpush3.bf16.msra.mxu0 %v3984_v9  ;;  %3669 = vmatpush3.bf16.msra.mxu1 %v3985_v10  ;;  %v598_v7 = vld [vmem:[%s4644_s3] sm:$0xf]  ;;  %v4002_v9 = vld [vmem:[#allocation4 + $0x30] sm:$0xff]   ;;  %v4003_v10 = vld [vmem:[#allocation4 + $0x28] sm:$0xff]  }
  0x35   : > { %3418 = vmatprep.subr.bf16.mxu0 %v3986_v11  ;;  %3670 = vmatprep.subr.bf16.mxu1 %v4242_v0  ;;  %v293_v40 = vsel %vm292_vm3, %v290_v33, %v291_v34  ;;  %v294_v41 = vsel %vm292_vm3, %v291_v34, %v290_v33  ;;  %v302_v42 = vsel %vm301_vm6, %v299_v35, %v300_v36  ;;  %v4004_v11 = vld [vmem:[#allocation4 + $0x20] sm:$0xff]   ;;  %v4016_v22 = vld [vmem:[#allocation2 + $0xe8] sm:$0xff]   ;;  %v4022_v30 = vld [vmem:[#allocation2 + $0xd8] sm:$0xff]  }
  0x36   : > { %v303_v43 = vsel %vm301_vm6, %v300_v36, %v299_v35  ;;  %540 = vmatprep.mubr.bf16.mxu0 %v355_v39  ;;  %v3184_v44 = vpack.c.bf16 %v293_v40, %v294_v41  ;;  %v4024_v31 = vld [vmem:[#allocation2 + $0x110] sm:$0xff]   ;;  %v4027_v33 = vld [vmem:[#allocation2 + $0x108] sm:$0xff]   ;;  %v4011_v37 = vld [vmem:[#allocation2 + $0x178] sm:$0xff]  }
  0x37   : > { %v3187_v45 = vpack.c.bf16 %v303_v43, %v302_v42  ;;  %v4028_v34 = vld [vmem:[#allocation2 + $0xc8] sm:$0xff]   ;;  %v4014_v39 = vld [vmem:[#allocation2 + $0x170] sm:$0xff]   ;;  %v4020_v41 = vld [vmem:[#allocation2 + $0x160] sm:$0xff]  }
  0x38   : > { %3419 = vmatpush3.bf16.msra.mxu0 %v3987_v12  ;;  %3671 = vmatpush3.bf16.msra.mxu1 %v3988_v14  ;;  %v4005_v12 = vld [vmem:[#allocation4 + $0x18] sm:$0xff]   ;;  %v4006_v14 = vld [vmem:[#allocation4 + $0x10] sm:$0xff]   ;;  %v4017_v40 = vld [vmem:[#allocation2 + $0x168] sm:$0xff]  }
  0x39   : > { %3420 = vmatprep.subr.bf16.mxu0 %v3989_v15  ;;  %3672 = vmatprep.subr.bf16.mxu1 %v4242_v0  ;;  %v4007_v15 = vld [vmem:[#allocation4 + $0x8] sm:$0xff]   ;;  %v4023_v42 = vld [vmem:[#allocation2 + $0x158] sm:$0xff]   ;;  %v4026_v43 = vld [vmem:[#allocation2 + $0x150] sm:$0xff]  }
  0x3c   : > { %3421 = vmatpush3.bf16.msra.mxu0 %v3990_v16  ;;  %3673 = vmatpush3.bf16.msra.mxu1 %v3991_v18  ;;  %v4008_v16 = vld [vmem:[#allocation4] sm:$0xff]   ;;  %v4010_v18 = vld [vmem:[#allocation2 + $0xf8] sm:$0xff]  }
  0x3d   : > { %3422 = vmatprep.subr.bf16.mxu0 %v3992_v19  ;;  %3674 = vmatprep.subr.bf16.mxu1 %v4242_v0  ;;  %v4012_v19 = vld [vmem:[#allocation2 + $0x130] sm:$0xff]  }
  0x40   : > { %3423 = vmatpush3.bf16.msra.mxu0 %v3993_v21  ;;  %3675 = vmatpush3.bf16.msra.mxu1 %v3994_v23  ;;  %v4015_v21 = vld [vmem:[#allocation2 + $0x128] sm:$0xff]  }
  0x41   : > { %3424 = vmatprep.subr.bf16.mxu0 %v3995_v24  ;;  %3676 = vmatprep.subr.bf16.mxu1 %v4242_v0  ;;  %v4018_v24 = vld [vmem:[#allocation2 + $0x120] sm:$0xff]  }
  0x44   : > { %3425 = vmatpush3.bf16.msra.mxu0 %v3996_v25  ;;  %3677 = vmatpush3.bf16.msra.mxu1 %v3997_v26  ;;  %v4019_v26 = vld [vmem:[#allocation2 + $0xe0] sm:$0xff]  }
  0x45   : > { %3426 = vmatprep.subr.bf16.mxu0 %v3998_v28  ;;  %3678 = vmatprep.subr.bf16.mxu1 %v4242_v0  ;;  %v4021_v28 = vld [vmem:[#allocation2 + $0x118] sm:$0xff]  }
  0x48   : > { %3427 = vmatpush3.bf16.msra.mxu0 %v3999_v32  ;;  %3679 = vmatpush3.bf16.msra.mxu1 %v4000_v38  ;;  %v4025_v32 = vld [vmem:[#allocation2 + $0xd0] sm:$0xff]  }
  0x49   : > { %3684 = vmatprep.subr.bf16.mxu1 %v4242_v0  ;;  %3454 = vmatprep.subr.bf16.mxu0 %v4009_v17  ;;  %v4034_v17 = vld [vmem:[#allocation4 + $0x70] sm:$0xff]  }
  0x4b   : > { %3185 = vmatmul.mubr.msk.bf16.vlgmr.msra.gmra.mxu0 %vm4359_vm5, %v3184_v44  ;;  %3681 = vmatmul.mubr.msk.bf16.vlgmr.msra.gmra.mxu1 %vm4367_vm7, %v3187_v45  ;;  %v4029_v44 = vld [vmem:[#allocation2 + $0x148] sm:$0xff]   ;;  %v4030_v45 = vld [vmem:[#allocation2 + $0x100] sm:$0xff]   ;;  %vm1543_vm5 = vcmask 1041408   ;;  %vm1709_vm7 = vcmask 1047554  }
  0x4c   : > { %3686 = vmatprep.mubr.msk.bf16.mxu1 %vm4243_vm0, %v4242_v0  ;;  %3455 = vmatpush3.bf16.msra.mxu0 %v4010_v18  ;;  %v4035_v18 = vld [vmem:[#allocation4 + $0x68] sm:$0xff]  }
  0x4d   : > { %3456 = vmatprep.subr.bf16.mxu0 %v4012_v19  ;;  %v4036_v19 = vld [vmem:[#allocation4 + $0x60] sm:$0xff]  }
  0x50   : > { %3457 = vmatpush3.bf16.msra.mxu0 %v4013_v20  ;;  %v4037_v20 = vld [vmem:[#allocation4 + $0x58] sm:$0xff]  }
  0x51   : > { %3458 = vmatprep.subr.bf16.mxu0 %v4015_v21  ;;  %v4038_v21 = vld [vmem:[#allocation4 + $0x50] sm:$0xff]  }
  0x54   : > { %3459 = vmatpush3.bf16.msra.mxu0 %v4016_v22  ;;  %v4039_v22 = vld [vmem:[#allocation4 + $0x48] sm:$0xff]  }
  0x55   : > { %3460 = vmatprep.subr.bf16.mxu0 %v4018_v24  ;;  %v4041_v24 = vld [vmem:[#allocation2 + $0x1f8] sm:$0xff]  }
  0x58   : > { %3461 = vmatpush3.bf16.msra.mxu0 %v4019_v26  ;;  %v4044_v26 = vld [vmem:[#allocation2 + $0x1f0] sm:$0xff]  }
  0x59   : > { %3462 = vmatprep.subr.bf16.mxu0 %v4021_v28  ;;  %v4047_v28 = vld [vmem:[#allocation2 + $0x1e8] sm:$0xff]  }
  0x5c   : > { %3463 = vmatpush3.bf16.msra.mxu0 %v4022_v30 }
  0x5d   : > { %3464 = vmatprep.subr.bf16.mxu0 %v4024_v31  ;;  %v4050_v31 = vld [vmem:[#allocation2 + $0x1e0] sm:$0xff]  }
  0x60   : > { %3465 = vmatpush3.bf16.msra.mxu0 %v4025_v32 }
  0x61   : > { %3466 = vmatprep.subr.bf16.mxu0 %v4027_v33  ;;  %v4051_v33 = vld [vmem:[#allocation2 + $0x1a0] sm:$0xff]  }
  0x64   : > { %3467 = vmatpush3.bf16.msra.mxu0 %v4028_v34 }
  0x65   : > { %3468 = vmatprep.subr.bf16.mxu0 %v4030_v45  ;;  %v4052_v45 = vld [vmem:[#allocation2 + $0x220] sm:$0xff]  }
 0x10b   : > { %v3428_v46 = vpop.f32.mrf.mxu0  ;;  %v583_v47 = vpop.f32.mrf.mxu1 }
 0x10d   : > { %v3429_v49 = vpop.f32.mrf.mxu0  ;;  %v3682_v51 = vpop.f32.mrf.mxu1 }
 0x10e   : > { %v3430_v50 = vadd.f32 %v3429_v49, %v3428_v46  ;;  %v4031_v46 = vld [vmem:[#allocation2 + $0xc0] sm:$0xff]  }
 0x10f   : > { %v3431_v52 = vpop.f32.mrf.mxu0  ;;  %v586_v54 = vpop.f32.mrf.mxu1  ;;  %3469 = vmatpush3.bf16.msra.mxu0 %v4031_v46  ;;  %v4055_v46 = vld [vmem:[#allocation2 + $0x218] sm:$0xff]  }
 0x110   : > { %v543_v53 = vadd.f32 %v3430_v50, %v3158_v48  ;;  %3730 = vmatprep.subr.bf16.mxu0 %v4242_v0 }
 0x111   : > { %v3432_v55 = vpop.f32.mrf.mxu0  ;;  %v3683_v58 = vpop.f32.mrf.mxu1 }
 0x112   : > { %v584_v56 = vadd.f32 %v583_v47, %v543_v53  ;;  %v3433_v57 = vadd.f32 %v3432_v55, %v3431_v52  ;;  %v4032_v47 = vld [vmem:[#allocation2 + $0x140] sm:$0xff]  }
 0x114   : > { %v546_v59 = vadd.f32 %v3433_v57, %v3158_v48  ;;  %v590_v60 = vmax.f32 %v584_v56, 0.0  ;;  %v756_v48 = vand.u32 7, %v4339_v13 }
 0x116   : > { %v587_v61 = vadd.f32 %v586_v54, %v546_v59  ;;  %v592_v63 = vrot.slane %v590_v60, 1  ;;  %vm4415_vm9 = vcmp.gt.s32.totalorder %v756_v48, 0  ;;  %vm4419_vm10 = vcmp.lt.s32.totalorder %v756_v48, 7  ;;  %v4058_v48 = vld [vmem:[#allocation2 + $0x210] sm:$0xff]  }
 0x117   : > { %vm3224_vm11 = vmpackc.low %vm4415_vm9, %vm4415_vm9  ;;  %vm4668_vm9 = vcmask 1043456  }
 0x118   : > { %v591_v62 = vmax.f32 %v587_v61, 0.0  ;;  %vm4649_vm12 = vmpackc.low %vm4419_vm10, %vm4419_vm10 }
 0x11a   : > { %v593_v1 = vrot.slane %v591_v62, 1 }
 0x11c   : > { %v595_v2 = vsel %vm301_vm6, %v593_v1, %v592_v63  ;;  %v594_v3 = vsel %vm301_vm6, %v592_v63, %v593_v1  ;;  %vm1539_vm6 = vcmask 31744  }
 0x11d   : > { %v597_v4 = vmax.f32 %v591_v62, %v595_v2  ;;  %v596_v5 = vmax.f32 %v590_v60, %v594_v3  ;;  %v3199_v62 = vld [vmem:[%s4643_s2 + $0x1] ss:$0 sm:$0xff] }
 0x11f   : > { %v599_v6 = vpack.c.bf16 %v597_v4, %v596_v5 }
 0x121   : > { %3685 = vmatpush3.bf16.msra.mxu1 %v599_v6 }
 0x122   : > { %3690 = vmatprep.subr.bf16.mxu1 %v4242_v0 }
 0x124   : > { %3687 = vmatmul.mubr.msk.bf16.vlgmr.msra.gmra.mxu1 %vm600_vm8, %v598_v7 }
 0x125   : > { %3706 = vmatprep.mubr.msk.bf16.mxu1 %vm4243_vm0, %v4242_v0  ;;  %3691 = vmatpush3.bf16.msra.mxu1 %v4001_v8 }
 0x126   : > { %3692 = vmatprep.subr.bf16.mxu1 %v4242_v0 }
 0x129   : > { %3693 = vmatpush3.bf16.msra.mxu1 %v4002_v9 }
 0x12a   : > { %3694 = vmatprep.subr.bf16.mxu1 %v4242_v0 }
 0x12d   : > { %3695 = vmatpush3.bf16.msra.mxu1 %v4003_v10 }
 0x12e   : > { %3696 = vmatprep.subr.bf16.mxu1 %v4242_v0 }
 0x131   : > { %3697 = vmatpush3.bf16.msra.mxu1 %v4004_v11 }
 0x132   : > { %3698 = vmatprep.subr.bf16.mxu1 %v4242_v0 }
 0x135   : > { %3699 = vmatpush3.bf16.msra.mxu1 %v4005_v12 }
 0x136   : > { %3700 = vmatprep.subr.bf16.mxu1 %v4242_v0 }
 0x139   : > { %3701 = vmatpush3.bf16.msra.mxu1 %v4006_v14 }
 0x13a   : > { %3702 = vmatprep.subr.bf16.mxu1 %v4242_v0 }
 0x13d   : > { %3703 = vmatpush3.bf16.msra.mxu1 %v4007_v15  ;;  %v3230_v15 = vld [vmem:[%s4644_s3 + $0x8] sm:$0x3] }
 0x13e   : > { %3704 = vmatprep.subr.bf16.mxu1 %v4242_v0 }
 0x141   : > { %3705 = vmatpush3.bf16.msra.mxu1 %v4008_v16  ;;  %v4033_v16 = vld [vmem:[#allocation4 + $0x78] sm:$0xff]  }
 0x142   : > { %3710 = vmatprep.subr.bf16.mxu1 %v4242_v0 }
 0x1e4   : > { %v638_v23 = vpop.f32.mrf.mxu1 }
 0x1e5   : > { %644 = vrot.lane.b32.xlu0 %v638_v23, %s4245_s20 }
 0x1e6   : > { %v3688_v25 = vpop.f32.mrf.mxu1 }
 0x1e7   : > { %v4042_v25 = vld [vmem:[#allocation2 + $0x1b8] sm:$0xff]  }
 0x1e8   : > { %v641_v27 = vpop.f32.mrf.mxu1 }
 0x1e9   : > { %v4045_v27 = vld [vmem:[#allocation2 + $0x1b0] sm:$0xff]  }
 0x1ea   : > { %v3689_v29 = vpop.f32.mrf.mxu1 }
 0x1eb   : > { %v4048_v29 = vld [vmem:[#allocation2 + $0x1a8] sm:$0xff]  }
 0x257   : > { %v645_v35 = vpop.permute.xlu0 %644 }
 0x258   : > { %v646_v36 = vmax.f32 %v638_v23, %v645_v35  ;;  %v4040_v23 = vld [vmem:[#allocation4 + $0x40] sm:$0xff]   ;;  %v4053_v35 = vld [vmem:[#allocation2 + $0x1d8] sm:$0xff]  }
 0x25a   : > { %v663_v38 = vpack.c.bf16 %v646_v36, %v646_v36 }
 0x25c   : > { %3707 = vmatmul.mubr.bf16.vlgmr.msra.gmra.mxu1 %v663_v38  ;;  %v4056_v38 = vld [vmem:[#allocation2 + $0x1d0] sm:$0xff]  }
 0x25d   : > { %3711 = vmatpush3.bf16.msra.mxu1 %v4011_v37  ;;  %3726 = vmatprep.mubr.msk.bf16.mxu1 %vm4243_vm0, %v4242_v0  ;;  %v4054_v37 = vld [vmem:[#allocation2 + $0x198] sm:$0xff]  }
 0x25e   : > { %3712 = vmatprep.subr.bf16.mxu1 %v4242_v0 }
 0x261   : > { %3713 = vmatpush3.bf16.msra.mxu1 %v4014_v39 }
 0x262   : > { %3714 = vmatprep.subr.bf16.mxu1 %v4242_v0 }
 0x265   : > { %3715 = vmatpush3.bf16.msra.mxu1 %v4017_v40 }
 0x266   : > { %3716 = vmatprep.subr.bf16.mxu1 %v4242_v0 }
 0x269   : > { %3717 = vmatpush3.bf16.msra.mxu1 %v4020_v41  ;;  %v4043_v41 = vld [vmem:[#allocation2 + $0x238] sm:$0xff]  }
 0x26a   : > { %3718 = vmatprep.subr.bf16.mxu1 %v4242_v0 }
 0x26d   : > { %3719 = vmatpush3.bf16.msra.mxu1 %v4023_v42 }
 0x26e   : > { %3720 = vmatprep.subr.bf16.mxu1 %v4242_v0 }
 0x271   : > { %3721 = vmatpush3.bf16.msra.mxu1 %v4026_v43  ;;  %v4046_v43 = vld [vmem:[#allocation2 + $0x230] sm:$0xff]  }
 0x272   : > { %3722 = vmatprep.subr.bf16.mxu1 %v4242_v0 }
 0x275   : > { %3723 = vmatpush3.bf16.msra.mxu1 %v4029_v44  ;;  %v4049_v44 = vld [vmem:[#allocation2 + $0x228] sm:$0xff]  }
 0x276   : > { %3724 = vmatprep.subr.bf16.mxu1 %v4242_v0 }
 0x279   : > { %3725 = vmatpush3.bf16.msra.mxu1 %v4032_v47  ;;  %v4057_v47 = vld [vmem:[#allocation2 + $0x190] sm:$0xff]  }
 0x27a   : > { %3496 = vmatprep.subr.bf16.mxu1 %v4041_v24 }
 0x31c   : > { %v746_v51 = vpop.f32.mrf.mxu1 }
 0x31d   : > { %v765_v52 = vrot.slane %v746_v51, 7  ;;  %v768_v53 = vrot.slane %v746_v51, 1  ;;  %v820_v54 = vpack.c.bf16 %v746_v51, %v746_v51  ;;  %v4059_v51 = vld [vmem:[#allocation2 + $0x1c8] sm:$0xff]  }
 0x31e   : > { %v3708_v55 = vpop.f32.mrf.mxu1 }
 0x31f   : > { %v3225_v56 = vpack.c.bf16 %v765_v52, %v765_v52  ;;  %v3228_v57 = vpack.c.bf16 %v768_v53, %v768_v53  ;;  %1006 = vmatprep.mubr.bf16.mxu0 %v820_v54  ;;  %v4060_v52 = vld [vmem:[#allocation2 + $0x188] sm:$0xff]   ;;  %v4062_v54 = vld [vmem:[#allocation2 + $0x1c0] sm:$0xff]  }
 0x320   : > { %v749_v58 = vpop.f32.mrf.mxu1  ;;  %v4061_v53 = vld [vmem:[#allocation2 + $0x208] sm:$0xff]   ;;  %v4063_v55 = vld [vmem:[#allocation2 + $0x180] sm:$0xff]  }
 0x321   : > { %3226 = vmatmul.mubr.msk.bf16.vlgmr.msra.gmra.mxu0 %vm3224_vm11, %v3225_v56  ;;  %3727 = vmatmul.mubr.msk.bf16.vlgmr.msra.gmra.mxu1 %vm4649_vm12, %v3228_v57  ;;  %v4064_v56 = vld [vmem:[#allocation2 + $0x200] sm:$0xff]   ;;  %v1221_v58 = vand.u32 3, %v4339_v13 }
 0x322   : > { %v3709_v59 = vpop.f32.mrf.mxu1  ;;  %3732 = vmatprep.mubr.msk.bf16.mxu0 %vm4243_vm0, %v4242_v0  ;;  %3497 = vmatpush3.bf16.msra.mxu1 %v4042_v25 }
 0x323   : > { %3498 = vmatprep.subr.bf16.mxu1 %v4044_v26  ;;  %vm4472_vm1 = vcmp.gt.s32.totalorder %v1221_v58, 0  ;;  %vm4476_vm2 = vcmp.lt.s32.totalorder %v1221_v58, 3 }
 0x324   : > { %vm3266_vm3 = vmpackc.low %vm4472_vm1, %vm4472_vm1 }
 0x325   : > { %vm3269_vm4 = vmpackc.low %vm4476_vm2, %vm4476_vm2 }
 0x326   : > { %3499 = vmatpush3.bf16.msra.mxu1 %v4045_v27 }
 0x327   : > { %3500 = vmatprep.subr.bf16.mxu1 %v4047_v28 }
 0x32a   : > { %3501 = vmatpush3.bf16.msra.mxu1 %v4048_v29 }
 0x32b   : > { %3502 = vmatprep.subr.bf16.mxu1 %v4050_v31 }
 0x32e   : > { %3503 = vmatpush3.bf16.msra.mxu1 %v4051_v33  ;;  %v4065_v33 = vld [vmem:[#allocation4 + $0xb8] sm:$0xff]  }
 0x32f   : > { %3504 = vmatprep.subr.bf16.mxu1 %v4053_v35  ;;  %v4067_v35 = vld [vmem:[#allocation4 + $0xa8] sm:$0xff]  }
 0x332   : > { %3505 = vmatpush3.bf16.msra.mxu1 %v4054_v37  ;;  %v4069_v37 = vld [vmem:[#allocation4 + $0x98] sm:$0xff]  }
 0x333   : > { %3506 = vmatprep.subr.bf16.mxu1 %v4056_v38  ;;  %v4070_v38 = vld [vmem:[#allocation4 + $0x90] sm:$0xff]  }
 0x336   : > { %3507 = vmatpush3.bf16.msra.mxu1 %v4057_v47 }
 0x337   : > { %3508 = vmatprep.subr.bf16.mxu1 %v4059_v51 }
 0x33a   : > { %3509 = vmatpush3.bf16.msra.mxu1 %v4060_v52  ;;  %v4083_v52 = vld [vmem:[#allocation2 + $0x260] sm:$0xff]  }
 0x33b   : > { %3510 = vmatprep.subr.bf16.mxu1 %v4062_v54  ;;  %v4085_v54 = vld [vmem:[#allocation2 + $0x298] sm:$0xff]  }
 0x33e   : > { %3511 = vmatpush3.bf16.msra.mxu1 %v4063_v55 }
 0x33f   : > { %3776 = vmatprep.subr.bf16.mxu1 %v4242_v0 }
 0x3e1   : > { %v3470_v60 = vpop.f32.mrf.mxu0  ;;  %v1048_v61 = vpop.f32.mrf.mxu1 }
 0x3e3   : > { %v3471_v63 = vpop.f32.mrf.mxu0  ;;  %v3728_v1 = vpop.f32.mrf.mxu1 }
 0x3e4   : > { %v3472_v2 = vadd.f32 %v3471_v63, %v3470_v60 }
 0x3e5   : > { %v3473_v3 = vpop.f32.mrf.mxu0  ;;  %v1051_v4 = vpop.f32.mrf.mxu1 }
 0x3e6   : > { %v1009_v5 = vadd.f32 %v3472_v2, %v3199_v62 }
 0x3e7   : > { %v3474_v6 = vpop.f32.mrf.mxu0  ;;  %v3729_v7 = vpop.f32.mrf.mxu1 }
 0x3e8   : > { %v1049_v8 = vadd.f32 %v1048_v61, %v1009_v5 }
 0x3ea   : > { %v1054_v9 = vmax.f32 %v1049_v8, 0.0 }
 0x3ec   : > { %v1055_v10 = vrot.slane %v1054_v9, 1 }
 0x3ee   : > { %v1056_v11 = vmax.f32 %v1054_v9, %v1055_v10 }
 0x3f0   : > { %v1059_v12 = vpack.c.bf16 %v1056_v11, %v1056_v11 }
 0x3f2   : > { %v1066_v14 = vsel %vm4648_vm13, %v1059_v12, 0  ;;  %v3241_v12 = vld [vmem:[%s4643_s2 + $0x2] ss:$0 sm:$0xff] }
 0x3f3   : > { %3731 = vmatpush3.bf16.msra.mxu0 %v1066_v14 }
 0x3f4   : > { %3736 = vmatprep.subr.bf16.mxu0 %v4242_v0 }
 0x3f6   : > { %3733 = vmatmul.mubr.msk.bf16.vlgmr.msra.gmra.mxu0 %vm4647_vm14, %v3230_v15 }
 0x3f7   : > { %3752 = vmatprep.mubr.msk.bf16.mxu0 %vm4243_vm0, %v4242_v0  ;;  %3737 = vmatpush3.bf16.msra.mxu0 %v4033_v16 }
 0x3f8   : > { %3738 = vmatprep.subr.bf16.mxu0 %v4242_v0 }
 0x3fb   : > { %3739 = vmatpush3.bf16.msra.mxu0 %v4034_v17 }
 0x3fc   : > { %3740 = vmatprep.subr.bf16.mxu0 %v4242_v0 }
 0x3ff   : > { %3741 = vmatpush3.bf16.msra.mxu0 %v4035_v18 }
 0x400   : > { %3742 = vmatprep.subr.bf16.mxu0 %v4242_v0 }
 0x403   : > { %3743 = vmatpush3.bf16.msra.mxu0 %v4036_v19 }
 0x404   : > { %3744 = vmatprep.subr.bf16.mxu0 %v4242_v0 }
 0x407   : > { %3745 = vmatpush3.bf16.msra.mxu0 %v4037_v20 }
 0x408   : > { %3746 = vmatprep.subr.bf16.mxu0 %v4242_v0 }
 0x40b   : > { %3747 = vmatpush3.bf16.msra.mxu0 %v4038_v21 }
 0x40c   : > { %3748 = vmatprep.subr.bf16.mxu0 %v4242_v0 }
 0x40f   : > { %3749 = vmatpush3.bf16.msra.mxu0 %v4039_v22 }
 0x410   : > { %3750 = vmatprep.subr.bf16.mxu0 %v4242_v0 }
 0x413   : > { %3751 = vmatpush3.bf16.msra.mxu0 %v4040_v23 }
 0x414   : > { %3756 = vmatprep.subr.bf16.mxu0 %v4242_v0 }
 0x4b6   : > { %v1102_v30 = vpop.f32.mrf.mxu0 }
 0x4b7   : > { %1108 = vrot.lane.b32.xlu0 %v1102_v30, %s4246_s25 }
 0x4b8   : > { %v3734_v32 = vpop.f32.mrf.mxu0 }
 0x4b9   : > { %v3272_v32 = vld [vmem:[%s4644_s3 + $0x10] sm:$0x1] }
 0x4ba   : > { %v1105_v34 = vpop.f32.mrf.mxu0 }
 0x4bb   : > { %v4066_v34 = vld [vmem:[#allocation4 + $0xb0] sm:$0xff]  }
 0x4bc   : > { %v3735_v36 = vpop.f32.mrf.mxu0 }
 0x4bd   : > { %v4068_v36 = vld [vmem:[#allocation4 + $0xa0] sm:$0xff]  }
 0x529   : > { %v1109_v39 = vpop.permute.xlu0 %1108 }
 0x52a   : > { %v1110_v40 = vmax.f32 %v1102_v30, %v1109_v39  ;;  %v4071_v39 = vld [vmem:[#allocation4 + $0x88] sm:$0xff]  }
 0x52c   : > { %v1128_v42 = vpack.c.bf16 %v1110_v40, %v1110_v40  ;;  %v4072_v40 = vld [vmem:[#allocation4 + $0x80] sm:$0xff]  }
 0x52e   : > { %3753 = vmatmul.mubr.bf16.vlgmr.msra.gmra.mxu0 %v1128_v42  ;;  %v4074_v42 = vld [vmem:[#allocation2 + $0x278] sm:$0xff]  }
 0x52f   : > { %3757 = vmatpush3.bf16.msra.mxu0 %v4043_v41  ;;  %3772 = vmatprep.mubr.msk.bf16.mxu0 %vm4243_vm0, %v4242_v0  ;;  %v4073_v41 = vld [vmem:[#allocation2 + $0x2b8] sm:$0xff]  }
 0x530   : > { %3758 = vmatprep.subr.bf16.mxu0 %v4242_v0 }
 0x533   : > { %3759 = vmatpush3.bf16.msra.mxu0 %v4046_v43  ;;  %v4076_v43 = vld [vmem:[#allocation2 + $0x2b0] sm:$0xff]  }
 0x534   : > { %3760 = vmatprep.subr.bf16.mxu0 %v4242_v0 }
 0x537   : > { %3761 = vmatpush3.bf16.msra.mxu0 %v4049_v44  ;;  %v4077_v44 = vld [vmem:[#allocation2 + $0x270] sm:$0xff]  }
 0x538   : > { %3762 = vmatprep.subr.bf16.mxu0 %v4242_v0 }
 0x53b   : > { %3763 = vmatpush3.bf16.msra.mxu0 %v4052_v45  ;;  %v4079_v45 = vld [vmem:[#allocation2 + $0x2a8] sm:$0xff]  }
 0x53c   : > { %3764 = vmatprep.subr.bf16.mxu0 %v4242_v0 }
 0x53f   : > { %3765 = vmatpush3.bf16.msra.mxu0 %v4055_v46  ;;  %v4080_v46 = vld [vmem:[#allocation2 + $0x268] sm:$0xff]  }
 0x540   : > { %3766 = vmatprep.subr.bf16.mxu0 %v4242_v0 }
 0x543   : > { %3767 = vmatpush3.bf16.msra.mxu0 %v4058_v48  ;;  %v4082_v48 = vld [vmem:[#allocation2 + $0x2a0] sm:$0xff]  }
 0x544   : > { %3768 = vmatprep.subr.bf16.mxu0 %v4242_v0 }
 0x547   : > { %3769 = vmatpush3.bf16.msra.mxu0 %v4061_v53 }
 0x548   : > { %3770 = vmatprep.subr.bf16.mxu0 %v4242_v0 }
 0x54b   : > { %3771 = vmatpush3.bf16.msra.mxu0 %v4064_v56  ;;  %v4086_v56 = vld [vmem:[#allocation2 + $0x258] sm:$0xff]  }
 0x54c   : > { %3538 = vmatprep.subr.bf16.mxu0 %v4073_v41  ;;  %v4097_v41 = vld [vmem:[#allocation4 + $0xf8] sm:$0xff]  }
 0x5ee   : > { %v1211_v57 = vpop.f32.mrf.mxu0 }
 0x5ef   : > { %v1231_v59 = vrot.slane %v1211_v57, 4  ;;  %v1293_v60 = vpack.c.bf16 %v1211_v57, %v1211_v57 }
 0x5f0   : > { %v3754_v61 = vpop.f32.mrf.mxu0 }
 0x5f1   : > { %v1232_v62 = vsel %vm1230_vm15, %v1231_v59, %v1211_v57  ;;  %1479 = vmatprep.mubr.bf16.mxu1 %v1293_v60  ;;  %v4075_v60 = vld [vmem:[#allocation2 + $0x2f8] sm:$0xff]  }
 0x5f2   : > { %v1233_v63 = vrot.slane %v1232_v62, 4  ;;  %v1214_v1 = vpop.f32.mrf.mxu0  ;;  %v4078_v62 = vld [vmem:[#allocation2 + $0x2f0] sm:$0xff]  }
 0x5f3   : > { %v4084_v1 = vld [vmem:[#allocation2 + $0x2e0] sm:$0xff]  }
 0x5f4   : > { %v1234_v4 = vsel %vm1230_vm15, %v1233_v63, %v1211_v57  ;;  %v3755_v5 = vpop.f32.mrf.mxu0  ;;  %v4088_v57 = vld [vmem:[#allocation2 + $0x290] sm:$0xff]   ;;  %v4081_v63 = vld [vmem:[#allocation2 + $0x2e8] sm:$0xff]  }
 0x5f5   : > { %v1236_v6 = vrot.slane %v1234_v4, 3  ;;  %v1240_v7 = vrot.slane %v1234_v4, 1  ;;  %v4087_v4 = vld [vmem:[#allocation2 + $0x2d8] sm:$0xff]   ;;  %v4089_v5 = vld [vmem:[#allocation2 + $0x250] sm:$0xff]  }
 0x5f7   : > { %v3267_v8 = vpack.c.bf16 %v1236_v6, %v1236_v6  ;;  %v3270_v9 = vpack.c.bf16 %v1240_v7, %v1240_v7  ;;  %v4090_v6 = vld [vmem:[#allocation2 + $0x2d0] sm:$0xff]   ;;  %v4091_v7 = vld [vmem:[#allocation2 + $0x288] sm:$0xff]  }
 0x5f9   : > { %3268 = vmatmul.mubr.msk.bf16.vlgmr.msra.gmra.mxu1 %vm3266_vm3, %v3267_v8  ;;  %3773 = vmatmul.mubr.msk.bf16.vlgmr.msra.gmra.mxu0 %vm3269_vm4, %v3270_v9  ;;  %v4092_v8 = vld [vmem:[#allocation2 + $0x248] sm:$0xff]  }
 0x5fa   : > { %3778 = vmatprep.mubr.msk.bf16.mxu1 %vm4243_vm0, %v4242_v0  ;;  %3539 = vmatpush3.bf16.msra.mxu0 %v4074_v42  ;;  %v4093_v9 = vld [vmem:[#allocation2 + $0x2c8] sm:$0xff]   ;;  %v4098_v42 = vld [vmem:[#allocation4 + $0xf0] sm:$0xff]  }
 0x5fb   : > { %3540 = vmatprep.subr.bf16.mxu0 %v4076_v43  ;;  %v4099_v43 = vld [vmem:[#allocation4 + $0xe8] sm:$0xff]  }
 0x5fe   : > { %3541 = vmatpush3.bf16.msra.mxu0 %v4077_v44  ;;  %v4100_v44 = vld [vmem:[#allocation4 + $0xe0] sm:$0xff]  }
 0x5ff   : > { %3542 = vmatprep.subr.bf16.mxu0 %v4079_v45  ;;  %v4101_v45 = vld [vmem:[#allocation4 + $0xd8] sm:$0xff]  }
 0x602   : > { %3543 = vmatpush3.bf16.msra.mxu0 %v4080_v46  ;;  %v4102_v46 = vld [vmem:[#allocation4 + $0xd0] sm:$0xff]  }
 0x603   : > { %3544 = vmatprep.subr.bf16.mxu0 %v4082_v48  ;;  %v4104_v48 = vld [vmem:[#allocation4 + $0xc0] sm:$0xff]  }
 0x606   : > { %3545 = vmatpush3.bf16.msra.mxu0 %v4083_v52  ;;  %v4106_v52 = vld [vmem:[#allocation2 + $0x338] sm:$0xff]  }
 0x607   : > { %3546 = vmatprep.subr.bf16.mxu0 %v4085_v54  ;;  %v4109_v54 = vld [vmem:[#allocation2 + $0x330] sm:$0xff]  }
 0x60a   : > { %3547 = vmatpush3.bf16.msra.mxu0 %v4086_v56  ;;  %v4112_v56 = vld [vmem:[#allocation2 + $0x328] sm:$0xff]  }
 0x60b   : > { %3548 = vmatprep.subr.bf16.mxu0 %v4088_v57  ;;  %v4114_v57 = vld [vmem:[#allocation2 + $0x360] sm:$0xff]  }
 0x60e   : > { %3549 = vmatpush3.bf16.msra.mxu0 %v4089_v5 }
 0x60f   : > { %3550 = vmatprep.subr.bf16.mxu0 %v4091_v7 }
 0x612   : > { %3551 = vmatpush3.bf16.msra.mxu0 %v4092_v8  ;;  %v4113_v8 = vld [vmem:[#allocation2 + $0x3a8] sm:$0xff]  }
 0x6b9   : > { %v3512_v10 = vpop.f32.mrf.mxu1  ;;  %v1521_v11 = vpop.f32.mrf.mxu0 }
 0x6bb   : > { %v3513_v14 = vpop.f32.mrf.mxu1  ;;  %v3774_v15 = vpop.f32.mrf.mxu0 }
 0x6bc   : > { %v3514_v16 = vadd.f32 %v3513_v14, %v3512_v10  ;;  %v4094_v10 = vld [vmem:[#allocation2 + $0x280] sm:$0xff]   ;;  %v1700_v15 = vand.u32 1, %v4339_v13 }
 0x6bd   : > { %v3515_v17 = vpop.f32.mrf.mxu1  ;;  %v1524_v18 = vpop.f32.mrf.mxu0  ;;  %3552 = vmatprep.subr.bf16.mxu0 %v4094_v10  ;;  %v4119_v10 = vld [vmem:[#allocation2 + $0x398] sm:$0xff]  }
 0x6be   : > { %v1482_v19 = vadd.f32 %v3514_v16, %v3241_v12  ;;  %v4096_v12 = vld [vmem:[#allocation2 + $0x2c0] sm:$0xff]   ;;  %vm1708_vm8 = vcmp.gt.s32.totalorder %v1700_v15, 0  ;;  %vm1718_vm14 = vcmp.lt.s32.totalorder %v1700_v15, 1  ;;  %v4124_v15 = vld [vmem:[#allocation2 + $0x308] sm:$0xff]  }
 0x6bf   : > { %v3516_v20 = vpop.f32.mrf.mxu1  ;;  %v3775_v21 = vpop.f32.mrf.mxu0  ;;  %vm3308_vm13 = vmpackc.low %vm1708_vm8, %vm1708_vm8 }
 0x6c0   : > { %v1522_v22 = vadd.f32 %v1521_v11, %v1482_v19  ;;  %v4095_v11 = vld [vmem:[#allocation2 + $0x240] sm:$0xff]   ;;  %vm3311_vm12 = vmpackc.low %vm1718_vm14, %vm1718_vm14 }
 0x6c1   : > { %3553 = vmatpush3.bf16.msra.mxu0 %v4095_v11  ;;  %v4121_v11 = vld [vmem:[#allocation2 + $0x310] sm:$0xff]   ;;  %vm4667_vm14 = vmpackc.low %vm4419_vm10, %vm4419_vm10  ;;  %vm4669_vm10 = vcmask 64512  }
 0x6c2   : > { %v1527_v23 = vmax.f32 %v1522_v22, 0.0  ;;  %3822 = vmatprep.subr.bf16.mxu0 %v4242_v0 }
 0x6c4   : > { %v1528_v24 = vrot.slane %v1527_v23, 4 }
 0x6c6   : > { %v1529_v25 = vsel %vm1230_vm15, %v1528_v24, %v1527_v23 }
 0x6c7   : > { %v1530_v26 = vrot.slane %v1529_v25, 4 }
 0x6c9   : > { %v1531_v27 = vsel %vm1230_vm15, %v1530_v26, %v1527_v23 }
 0x6ca   : > { %v1533_v28 = vrot.slane %v1531_v27, 1  ;;  %v3283_v27 = vld [vmem:[%s4643_s2 + $0x3] ss:$0 sm:$0xff] }
 0x6cc   : > { %v1535_v29 = vmax.f32 %v1527_v23, %v1533_v28 }
 0x6ce   : > { %v1538_v30 = vpack.c.bf16 %v1535_v29, %v1535_v29 }
 0x6d0   : > { %v1545_v31 = vsel %vm1543_vm5, %v1538_v30, 0 }
 0x6d1   : > { %3777 = vmatpush3.bf16.msra.mxu1 %v1545_v31 }
 0x6d2   : > { %3782 = vmatprep.subr.bf16.mxu1 %v4242_v0 }
 0x6d4   : > { %3779 = vmatmul.mubr.msk.bf16.vlgmr.msra.gmra.mxu1 %vm1539_vm6, %v3272_v32 }
 0x6d5   : > { %3798 = vmatprep.mubr.msk.bf16.mxu1 %vm4243_vm0, %v4242_v0  ;;  %3783 = vmatpush3.bf16.msra.mxu1 %v4065_v33 }
 0x6d6   : > { %3784 = vmatprep.subr.bf16.mxu1 %v4242_v0 }
 0x6d9   : > { %3785 = vmatpush3.bf16.msra.mxu1 %v4066_v34 }
 0x6da   : > { %3786 = vmatprep.subr.bf16.mxu1 %v4242_v0 }
 0x6dd   : > { %3787 = vmatpush3.bf16.msra.mxu1 %v4067_v35 }
 0x6de   : > { %3788 = vmatprep.subr.bf16.mxu1 %v4242_v0 }
 0x6e1   : > { %3789 = vmatpush3.bf16.msra.mxu1 %v4068_v36 }
 0x6e2   : > { %3790 = vmatprep.subr.bf16.mxu1 %v4242_v0 }
 0x6e5   : > { %3791 = vmatpush3.bf16.msra.mxu1 %v4069_v37 }
 0x6e6   : > { %3792 = vmatprep.subr.bf16.mxu1 %v4242_v0 }
 0x6e9   : > { %3793 = vmatpush3.bf16.msra.mxu1 %v4070_v38 }
 0x6ea   : > { %3794 = vmatprep.subr.bf16.mxu1 %v4242_v0 }
 0x6ed   : > { %3795 = vmatpush3.bf16.msra.mxu1 %v4071_v39 }
 0x6ee   : > { %3796 = vmatprep.subr.bf16.mxu1 %v4242_v0 }
 0x6f1   : > { %3797 = vmatpush3.bf16.msra.mxu1 %v4072_v40  ;;  %v3314_v40 = vld [vmem:[%s4644_s3 + $0x18] sm:$0x3] }
 0x6f2   : > { %3802 = vmatprep.subr.bf16.mxu1 %v4242_v0 }
 0x794   : > { %v1581_v47 = vpop.f32.mrf.mxu1 }
 0x795   : > { %1587 = vrot.lane.b32.xlu1 %v1581_v47, %s4247_s30 }
 0x796   : > { %v3780_v51 = vpop.f32.mrf.mxu1 }
 0x797   : > { %v4105_v51 = vld [vmem:[#allocation2 + $0x378] sm:$0xff]  }
 0x798   : > { %v1584_v53 = vpop.f32.mrf.mxu1 }
 0x799   : > { %v4108_v53 = vld [vmem:[#allocation2 + $0x370] sm:$0xff]  }
 0x79a   : > { %v3781_v55 = vpop.f32.mrf.mxu1 }
 0x79b   : > { %v4111_v55 = vld [vmem:[#allocation2 + $0x368] sm:$0xff]  }
 0x807   : > { %v1588_v58 = vpop.permute.xlu1 %1587 }
 0x808   : > { %v1589_v59 = vmax.f32 %v1581_v47, %v1588_v58  ;;  %v4103_v47 = vld [vmem:[#allocation4 + $0xc8] sm:$0xff]   ;;  %v4115_v58 = vld [vmem:[#allocation2 + $0x320] sm:$0xff]  }
 0x80a   : > { %v1607_v61 = vpack.c.bf16 %v1589_v59, %v1589_v59  ;;  %v4117_v59 = vld [vmem:[#allocation2 + $0x358] sm:$0xff]  }
 0x80c   : > { %3799 = vmatmul.mubr.bf16.vlgmr.msra.gmra.mxu1 %v1607_v61  ;;  %v4120_v61 = vld [vmem:[#allocation2 + $0x350] sm:$0xff]  }
 0x80d   : > { %3803 = vmatpush3.bf16.msra.mxu1 %v4075_v60  ;;  %3818 = vmatprep.mubr.msk.bf16.mxu1 %vm4243_vm0, %v4242_v0  ;;  %v4118_v60 = vld [vmem:[#allocation2 + $0x318] sm:$0xff]  }
 0x80e   : > { %3804 = vmatprep.subr.bf16.mxu1 %v4242_v0 }
 0x811   : > { %3805 = vmatpush3.bf16.msra.mxu1 %v4078_v62 }
 0x812   : > { %3806 = vmatprep.subr.bf16.mxu1 %v4242_v0 }
 0x815   : > { %3807 = vmatpush3.bf16.msra.mxu1 %v4081_v63  ;;  %v4107_v63 = vld [vmem:[#allocation2 + $0x3b8] sm:$0xff]  }
 0x816   : > { %3808 = vmatprep.subr.bf16.mxu1 %v4242_v0 }
 0x819   : > { %3809 = vmatpush3.bf16.msra.mxu1 %v4084_v1 }
 0x81a   : > { %3810 = vmatprep.subr.bf16.mxu1 %v4242_v0 }
 0x81d   : > { %3811 = vmatpush3.bf16.msra.mxu1 %v4087_v4 }
 0x81e   : > { %3812 = vmatprep.subr.bf16.mxu1 %v4242_v0 }
 0x821   : > { %3813 = vmatpush3.bf16.msra.mxu1 %v4090_v6  ;;  %v4110_v6 = vld [vmem:[#allocation2 + $0x3b0] sm:$0xff]  }
 0x822   : > { %3814 = vmatprep.subr.bf16.mxu1 %v4242_v0 }
 0x825   : > { %3815 = vmatpush3.bf16.msra.mxu1 %v4093_v9  ;;  %v4116_v9 = vld [vmem:[#allocation2 + $0x3a0] sm:$0xff]  }
 0x826   : > { %3816 = vmatprep.subr.bf16.mxu1 %v4242_v0 }
 0x829   : > { %3817 = vmatpush3.bf16.msra.mxu1 %v4096_v12  ;;  %v4122_v12 = vld [vmem:[#allocation2 + $0x390] sm:$0xff]  }
 0x82a   : > { %3580 = vmatprep.subr.bf16.mxu1 %v4105_v51  ;;  %v4132_v51 = vld [vmem:[#allocation4 + $0x120] sm:$0xff]  }
 0x8cc   : > { %v1690_v14 = vpop.f32.mrf.mxu1 }
 0x8cd   : > { %v1710_v16 = vrot.slane %v1690_v14, 6  ;;  %v1770_v17 = vpack.c.bf16 %v1690_v14, %v1690_v14 }
 0x8ce   : > { %v3800_v18 = vpop.f32.mrf.mxu1 }
 0x8cf   : > { %v1711_v19 = vsel %vm1709_vm7, %v1710_v16, %v1690_v14  ;;  %1956 = vmatprep.mubr.bf16.mxu0 %v1770_v17  ;;  %v4125_v16 = vld [vmem:[#allocation2 + $0x388] sm:$0xff]   ;;  %v4126_v17 = vld [vmem:[#allocation2 + $0x340] sm:$0xff]  }
 0x8d0   : > { %v1712_v20 = vrot.slane %v1711_v19, 6  ;;  %v1693_v21 = vpop.f32.mrf.mxu1  ;;  %v4127_v18 = vld [vmem:[#allocation2 + $0x300] sm:$0xff]  }
 0x8d1   : > { %v4128_v19 = vld [vmem:[#allocation2 + $0x380] sm:$0xff]  }
 0x8d2   : > { %v1713_v22 = vsel %vm1709_vm7, %v1712_v20, %v1690_v14  ;;  %v3801_v23 = vpop.f32.mrf.mxu1  ;;  %v4123_v14 = vld [vmem:[#allocation2 + $0x348] sm:$0xff]  }
 0x8d3   : > { %v1715_v24 = vrot.slane %v1713_v22, 1 }
 0x8d5   : > { %v3309_v25 = vpack.c.bf16 %v1715_v24, %v1715_v24 }
 0x8d7   : > { %3310 = vmatmul.mubr.msk.bf16.vlgmr.msra.gmra.mxu0 %vm3308_vm13, %v3309_v25  ;;  %3819 = vmatmul.mubr.msk.bf16.vlgmr.msra.gmra.mxu1 %vm3311_vm12, %v3309_v25  ;;  %vm2012_vm12 = vcmask 1040384   ;;  %vm2008_vm13 = vcmask 15360  }
 0x8d8   : > { %3824 = vmatprep.mubr.msk.bf16.mxu0 %vm4243_vm0, %v4242_v0  ;;  %3581 = vmatpush3.bf16.msra.mxu1 %v4106_v52  ;;  %v4133_v52 = vld [vmem:[#allocation4 + $0x118] sm:$0xff]  }
 0x8d9   : > { %3582 = vmatprep.subr.bf16.mxu1 %v4108_v53  ;;  %v4134_v53 = vld [vmem:[#allocation4 + $0x110] sm:$0xff]  }
 0x8dc   : > { %3583 = vmatpush3.bf16.msra.mxu1 %v4109_v54  ;;  %v4135_v54 = vld [vmem:[#allocation4 + $0x108] sm:$0xff]  }
 0x8dd   : > { %3584 = vmatprep.subr.bf16.mxu1 %v4111_v55  ;;  %v4136_v55 = vld [vmem:[#allocation4 + $0x100] sm:$0xff]  }
 0x8e0   : > { %3585 = vmatpush3.bf16.msra.mxu1 %v4112_v56  ;;  %v4137_v56 = vld [vmem:[#allocation2 + $0x438] sm:$0xff]  }
 0x8e1   : > { %3586 = vmatprep.subr.bf16.mxu1 %v4114_v57  ;;  %v4138_v57 = vld [vmem:[#allocation2 + $0x3f8] sm:$0xff]  }
 0x8e4   : > { %3587 = vmatpush3.bf16.msra.mxu1 %v4115_v58  ;;  %v4140_v58 = vld [vmem:[#allocation2 + $0x430] sm:$0xff]  }
 0x8e5   : > { %3588 = vmatprep.subr.bf16.mxu1 %v4117_v59  ;;  %v4141_v59 = vld [vmem:[#allocation2 + $0x3f0] sm:$0xff]  }
 0x8e8   : > { %3589 = vmatpush3.bf16.msra.mxu1 %v4118_v60  ;;  %v4143_v60 = vld [vmem:[#allocation2 + $0x428] sm:$0xff]  }
 0x8e9   : > { %3590 = vmatprep.subr.bf16.mxu1 %v4120_v61  ;;  %v4144_v61 = vld [vmem:[#allocation2 + $0x3e8] sm:$0xff]  }
 0x8ec   : > { %3591 = vmatpush3.bf16.msra.mxu1 %v4121_v11 }
 0x8ed   : > { %3592 = vmatprep.subr.bf16.mxu1 %v4123_v14 }
 0x8f0   : > { %3593 = vmatpush3.bf16.msra.mxu1 %v4124_v15  ;;  %v4142_v15 = vld [vmem:[#allocation2 + $0x470] sm:$0xff]  }
 0x8f1   : > { %3594 = vmatprep.subr.bf16.mxu1 %v4126_v17  ;;  %v4145_v17 = vld [vmem:[#allocation2 + $0x468] sm:$0xff]  }
 0x8f4   : > { %3595 = vmatpush3.bf16.msra.mxu1 %v4127_v18  ;;  %v4148_v18 = vld [vmem:[#allocation2 + $0x460] sm:$0xff]  }
 0x8f5   : > { %3868 = vmatprep.subr.bf16.mxu1 %v4242_v0 }
 0x997   : > { %v3554_v13 = vpop.f32.mrf.mxu0  ;;  %v1998_v26 = vpop.f32.mrf.mxu1 }
 0x999   : > { %v3555_v28 = vpop.f32.mrf.mxu0  ;;  %v3820_v29 = vpop.f32.mrf.mxu1 }
 0x99a   : > { %v3556_v30 = vadd.f32 %v3555_v28, %v3554_v13 }
 0x99b   : > { %v3557_v31 = vpop.f32.mrf.mxu0  ;;  %v2001_v32 = vpop.f32.mrf.mxu1 }
 0x99c   : > { %v1959_v33 = vadd.f32 %v3556_v30, %v3283_v27 }
 0x99d   : > { %v3558_v34 = vpop.f32.mrf.mxu0  ;;  %v3821_v35 = vpop.f32.mrf.mxu1 }
 0x99e   : > { %v1999_v36 = vadd.f32 %v1998_v26, %v1959_v33  ;;  %v3325_v34 = vld [vmem:[%s4643_s2 + $0x4] ss:$0 sm:$0xff] }
 0x9a0   : > { %v2004_v37 = vmax.f32 %v1999_v36, 0.0 }
 0x9a2   : > { %v2007_v38 = vpack.c.bf16 %v2004_v37, %v2004_v37 }
 0x9a4   : > { %v2014_v39 = vsel %vm2012_vm12, %v2007_v38, 0 }
 0x9a5   : > { %3823 = vmatpush3.bf16.msra.mxu0 %v2014_v39 }
 0x9a6   : > { %3828 = vmatprep.subr.bf16.mxu0 %v4242_v0 }
 0x9a8   : > { %3825 = vmatmul.mubr.msk.bf16.vlgmr.msra.gmra.mxu0 %vm2008_vm13, %v3314_v40 }
 0x9a9   : > { %3829 = vmatpush3.bf16.msra.mxu0 %v4097_v41  ;;  %3844 = vmatprep.mubr.msk.bf16.mxu0 %vm4243_vm0, %v4242_v0 }
 0x9aa   : > { %3830 = vmatprep.subr.bf16.mxu0 %v4242_v0 }
 0x9ad   : > { %3831 = vmatpush3.bf16.msra.mxu0 %v4098_v42 }
 0x9ae   : > { %3832 = vmatprep.subr.bf16.mxu0 %v4242_v0 }
 0x9b1   : > { %3833 = vmatpush3.bf16.msra.mxu0 %v4099_v43 }
 0x9b2   : > { %3834 = vmatprep.subr.bf16.mxu0 %v4242_v0 }
 0x9b5   : > { %3835 = vmatpush3.bf16.msra.mxu0 %v4100_v44 }
 0x9b6   : > { %3836 = vmatprep.subr.bf16.mxu0 %v4242_v0 }
 0x9b9   : > { %3837 = vmatpush3.bf16.msra.mxu0 %v4101_v45  ;;  %v3356_v45 = vld [vmem:[%s4644_s3 + $0x20] sm:$0xf] }
 0x9ba   : > { %3838 = vmatprep.subr.bf16.mxu0 %v4242_v0 }
 0x9bd   : > { %3839 = vmatpush3.bf16.msra.mxu0 %v4102_v46  ;;  %v4129_v46 = vld [vmem:[#allocation4 + $0x138] sm:$0xff]  }
 0x9be   : > { %3840 = vmatprep.subr.bf16.mxu0 %v4242_v0 }
 0x9c1   : > { %3841 = vmatpush3.bf16.msra.mxu0 %v4103_v47  ;;  %v4130_v47 = vld [vmem:[#allocation4 + $0x130] sm:$0xff]  }
 0x9c2   : > { %3842 = vmatprep.subr.bf16.mxu0 %v4242_v0 }
 0x9c5   : > { %3843 = vmatpush3.bf16.msra.mxu0 %v4104_v48  ;;  %v4131_v48 = vld [vmem:[#allocation4 + $0x128] sm:$0xff]  }
 0x9c6   : > { %3848 = vmatprep.subr.bf16.mxu0 %v4242_v0 }
 0xa68   : > { %v2050_v62 = vpop.f32.mrf.mxu0 }
 0xa69   : > { %v2073_v1 = vpack.c.bf16 %v2050_v62, %v2050_v62  ;;  %v4146_v62 = vld [vmem:[#allocation2 + $0x420] sm:$0xff]  }
 0xa6a   : > { %v3826_v4 = vpop.f32.mrf.mxu0 }
 0xa6b   : > { %3845 = vmatmul.mubr.bf16.vlgmr.msra.gmra.mxu0 %v2073_v1  ;;  %v4149_v1 = vld [vmem:[#allocation2 + $0x418] sm:$0xff]  }
 0xa6c   : > { %v2053_v5 = vpop.f32.mrf.mxu0  ;;  %3849 = vmatpush3.bf16.msra.mxu0 %v4107_v63  ;;  %3864 = vmatprep.mubr.msk.bf16.mxu0 %vm4243_vm0, %v4242_v0  ;;  %v4147_v63 = vld [vmem:[#allocation2 + $0x3e0] sm:$0xff]   ;;  %v4150_v4 = vld [vmem:[#allocation2 + $0x3d8] sm:$0xff]  }
 0xa6d   : > { %3850 = vmatprep.subr.bf16.mxu0 %v4242_v0  ;;  %v4152_v5 = vld [vmem:[#allocation2 + $0x410] sm:$0xff]  }
 0xa6e   : > { %v3827_v7 = vpop.f32.mrf.mxu0 }
 0xa6f   : > { %v4155_v7 = vld [vmem:[#allocation2 + $0x408] sm:$0xff]  }
 0xa70   : > { %3851 = vmatpush3.bf16.msra.mxu0 %v4110_v6  ;;  %v4153_v6 = vld [vmem:[#allocation2 + $0x3d0] sm:$0xff]  }
 0xa71   : > { %3852 = vmatprep.subr.bf16.mxu0 %v4242_v0 }
 0xa74   : > { %3853 = vmatpush3.bf16.msra.mxu0 %v4113_v8  ;;  %v4156_v8 = vld [vmem:[#allocation2 + $0x3c8] sm:$0xff]  }
 0xa75   : > { %3854 = vmatprep.subr.bf16.mxu0 %v4242_v0 }
 0xa78   : > { %3855 = vmatpush3.bf16.msra.mxu0 %v4116_v9 }
 0xa79   : > { %3856 = vmatprep.subr.bf16.mxu0 %v4242_v0 }
 0xa7c   : > { %3857 = vmatpush3.bf16.msra.mxu0 %v4119_v10  ;;  %v4139_v10 = vld [vmem:[#allocation2 + $0x478] sm:$0xff]  }
 0xa7d   : > { %3858 = vmatprep.subr.bf16.mxu0 %v4242_v0 }
 0xa80   : > { %3859 = vmatpush3.bf16.msra.mxu0 %v4122_v12 }
 0xa81   : > { %3860 = vmatprep.subr.bf16.mxu0 %v4242_v0 }
 0xa84   : > { %3861 = vmatpush3.bf16.msra.mxu0 %v4125_v16 }
 0xa85   : > { %3862 = vmatprep.subr.bf16.mxu0 %v4242_v0 }
 0xa88   : > { %3863 = vmatpush3.bf16.msra.mxu0 %v4128_v19  ;;  %v4151_v19 = vld [vmem:[#allocation2 + $0x458] sm:$0xff]  }
 0xa89   : > { %3622 = vmatprep.subr.bf16.mxu0 %v4137_v56 }
 0xb2b   : > { %v2156_v20 = vpop.f32.mrf.mxu0 }
 0xb2c   : > { %v2162_v21 = vrot.slane %v2156_v20, 4  ;;  %v2223_v22 = vpack.c.bf16 %v2156_v20, %v2156_v20 }
 0xb2d   : > { %v3846_v23 = vpop.f32.mrf.mxu0 }
 0xb2e   : > { %v2163_v24 = vsel %vm1230_vm15, %v2162_v21, %v2156_v20  ;;  %2409 = vmatprep.mubr.bf16.mxu1 %v2223_v22  ;;  %v4157_v21 = vld [vmem:[#allocation2 + $0x448] sm:$0xff]   ;;  %v4158_v22 = vld [vmem:[#allocation2 + $0x400] sm:$0xff]  }
 0xb2f   : > { %v2164_v25 = vrot.slane %v2163_v24, 4  ;;  %v2159_v13 = vpop.f32.mrf.mxu0  ;;  %v4159_v23 = vld [vmem:[#allocation2 + $0x3c0] sm:$0xff]  }
 0xb30   : > { %v4160_v24 = vld [vmem:[#allocation2 + $0x440] sm:$0xff]  }
 0xb31   : > { %v2165_v26 = vsel %vm1230_vm15, %v2164_v25, %v2156_v20  ;;  %v3847_v27 = vpop.f32.mrf.mxu0  ;;  %v4154_v20 = vld [vmem:[#allocation2 + $0x450] sm:$0xff]  }
 0xb32   : > { %v2167_v28 = vrot.slane %v2165_v26, 3  ;;  %v2170_v29 = vrot.slane %v2165_v26, 1 }
 0xb34   : > { %v3351_v30 = vpack.c.bf16 %v2167_v28, %v2167_v28  ;;  %v3354_v31 = vpack.c.bf16 %v2170_v29, %v2170_v29 }
 0xb36   : > { %3352 = vmatmul.mubr.msk.bf16.vlgmr.msra.gmra.mxu1 %vm3266_vm3, %v3351_v30  ;;  %3865 = vmatmul.mubr.msk.bf16.vlgmr.msra.gmra.mxu0 %vm3269_vm4, %v3354_v31 }
 0xb37   : > { %3870 = vmatprep.mubr.msk.bf16.mxu1 %vm4243_vm0, %v4242_v0  ;;  %3623 = vmatpush3.bf16.msra.mxu0 %v4138_v57 }
 0xb38   : > { %3624 = vmatprep.subr.bf16.mxu0 %v4140_v58 }
 0xb3b   : > { %3625 = vmatpush3.bf16.msra.mxu0 %v4141_v59 }
 0xb3c   : > { %3626 = vmatprep.subr.bf16.mxu0 %v4143_v60 }
 0xb3f   : > { %3627 = vmatpush3.bf16.msra.mxu0 %v4144_v61 }
 0xb40   : > { %3628 = vmatprep.subr.bf16.mxu0 %v4146_v62 }
 0xb43   : > { %3629 = vmatpush3.bf16.msra.mxu0 %v4147_v63 }
 0xb44   : > { %3630 = vmatprep.subr.bf16.mxu0 %v4149_v1 }
 0xb47   : > { %3631 = vmatpush3.bf16.msra.mxu0 %v4150_v4 }
 0xb48   : > { %3632 = vmatprep.subr.bf16.mxu0 %v4152_v5 }
 0xb4b   : > { %3633 = vmatpush3.bf16.msra.mxu0 %v4153_v6 }
 0xb4c   : > { %3634 = vmatprep.subr.bf16.mxu0 %v4155_v7 }
 0xb4f   : > { %3635 = vmatpush3.bf16.msra.mxu0 %v4156_v8 }
 0xb50   : > { %3636 = vmatprep.subr.bf16.mxu0 %v4158_v22 }
 0xb53   : > { %3637 = vmatpush3.bf16.msra.mxu0 %v4159_v23 }
 0xb54   : > { %3914 = vmatprep.subr.bf16.mxu0 %v4242_v0 }
 0xbf6   : > { %v3596_v32 = vpop.f32.mrf.mxu1  ;;  %v2451_v33 = vpop.f32.mrf.mxu0 }
 0xbf8   : > { %v3597_v35 = vpop.f32.mrf.mxu1  ;;  %v3866_v36 = vpop.f32.mrf.mxu0 }
 0xbf9   : > { %v3598_v2 = vadd.f32 %v3597_v35, %v3596_v32  ;;  %v3367_v35 = vld [vmem:[%s4643_s2 + $0x5] ss:$0 sm:$0xff] }
 0xbfa   : > { %v3599_v37 = vpop.f32.mrf.mxu1  ;;  %v2454_v38 = vpop.f32.mrf.mxu0 }
 0xbfb   : > { %v2412_v39 = vadd.f32 %v3598_v2, %v3325_v34 }
 0xbfc   : > { %v3600_v40 = vpop.f32.mrf.mxu1  ;;  %v3867_v41 = vpop.f32.mrf.mxu0 }
 0xbfd   : > { %v2452_v3 = vadd.f32 %v2451_v33, %v2412_v39 }
 0xbff   : > { %v2457_v42 = vmax.f32 %v2452_v3, 0.0 }
 0xc01   : > { %v2460_v43 = vpack.c.bf16 %v2457_v42, %v2457_v42 }
 0xc03   : > { %v2465_v44 = vsel %vm1543_vm5, %v2460_v43, 0 }
 0xc04   : > { %3869 = vmatpush3.bf16.msra.mxu1 %v2465_v44  ;;  %v4161_v44 = vld [vmem:[%s4644_s3 + $0x28] sm:$0xff]  }
 0xc05   : > { %3874 = vmatprep.subr.bf16.mxu1 %v4242_v0 }
 0xc07   : > { %3871 = vmatmul.mubr.msk.bf16.vlgmr.msra.gmra.mxu1 %vm1539_vm6, %v3356_v45  ;;  %v4162_v45 = vld [vmem:[#allocation4 + $0x178] sm:$0xff]  }
 0xc08   : > { %3875 = vmatpush3.bf16.msra.mxu1 %v4129_v46  ;;  %3890 = vmatprep.mubr.msk.bf16.mxu1 %vm4243_vm0, %v4242_v0  ;;  %v4163_v46 = vld [vmem:[#allocation4 + $0x170] sm:$0xff]  }
 0xc09   : > { %3876 = vmatprep.subr.bf16.mxu1 %v4242_v0 }
 0xc0c   : > { %3877 = vmatpush3.bf16.msra.mxu1 %v4130_v47  ;;  %v4164_v47 = vld [vmem:[#allocation4 + $0x168] sm:$0xff]  }
 0xc0d   : > { %3878 = vmatprep.subr.bf16.mxu1 %v4242_v0 }
 0xc10   : > { %3879 = vmatpush3.bf16.msra.mxu1 %v4131_v48  ;;  %v4165_v48 = vld [vmem:[#allocation4 + $0x160] sm:$0xff]  }
 0xc11   : > { %3880 = vmatprep.subr.bf16.mxu1 %v4242_v0 }
 0xc14   : > { %3881 = vmatpush3.bf16.msra.mxu1 %v4132_v51  ;;  %v4166_v51 = vld [vmem:[#allocation4 + $0x158] sm:$0xff]  }
 0xc15   : > { %3882 = vmatprep.subr.bf16.mxu1 %v4242_v0 }
 0xc18   : > { %3883 = vmatpush3.bf16.msra.mxu1 %v4133_v52  ;;  %v4167_v52 = vld [vmem:[#allocation4 + $0x150] sm:$0xff]  }
 0xc19   : > { %3884 = vmatprep.subr.bf16.mxu1 %v4242_v0 }
 0xc1c   : > { %3885 = vmatpush3.bf16.msra.mxu1 %v4134_v53  ;;  %v4168_v53 = vld [vmem:[#allocation4 + $0x148] sm:$0xff]  }
 0xc1d   : > { %3886 = vmatprep.subr.bf16.mxu1 %v4242_v0 }
 0xc20   : > { %3887 = vmatpush3.bf16.msra.mxu1 %v4135_v54  ;;  %v4169_v54 = vld [vmem:[#allocation4 + $0x140] sm:$0xff]  }
 0xc21   : > { %3888 = vmatprep.subr.bf16.mxu1 %v4242_v0 }
 0xc24   : > { %3889 = vmatpush3.bf16.msra.mxu1 %v4136_v55 }
 0xc25   : > { %3894 = vmatprep.subr.bf16.mxu1 %v4242_v0 }
 0xcc7   : > { %v2501_v9 = vpop.f32.mrf.mxu1 }
 0xcc8   : > { %v2524_v11 = vpack.c.bf16 %v2501_v9, %v2501_v9 }
 0xcc9   : > { %v3872_v12 = vpop.f32.mrf.mxu1 }
 0xcca   : > { %3891 = vmatmul.mubr.bf16.vlgmr.msra.gmra.mxu1 %v2524_v11 }
 0xccb   : > { %v2504_v14 = vpop.f32.mrf.mxu1  ;;  %3895 = vmatpush3.bf16.msra.mxu1 %v4139_v10  ;;  %3910 = vmatprep.mubr.msk.bf16.mxu1 %vm4243_vm0, %v4242_v0 }
 0xccc   : > { %3896 = vmatprep.subr.bf16.mxu1 %v4242_v0 }
 0xccd   : > { %v3873_v16 = vpop.f32.mrf.mxu1 }
 0xccf   : > { %3897 = vmatpush3.bf16.msra.mxu1 %v4142_v15 }
 0xcd0   : > { %3898 = vmatprep.subr.bf16.mxu1 %v4242_v0 }
 0xcd3   : > { %3899 = vmatpush3.bf16.msra.mxu1 %v4145_v17 }
 0xcd4   : > { %3900 = vmatprep.subr.bf16.mxu1 %v4242_v0 }
 0xcd7   : > { %3901 = vmatpush3.bf16.msra.mxu1 %v4148_v18 }
 0xcd8   : > { %3902 = vmatprep.subr.bf16.mxu1 %v4242_v0 }
 0xcdb   : > { %3903 = vmatpush3.bf16.msra.mxu1 %v4151_v19 }
 0xcdc   : > { %3904 = vmatprep.subr.bf16.mxu1 %v4242_v0 }
 0xcdf   : > { %3905 = vmatpush3.bf16.msra.mxu1 %v4154_v20 }
 0xce0   : > { %3906 = vmatprep.subr.bf16.mxu1 %v4242_v0 }
 0xce3   : > { %3907 = vmatpush3.bf16.msra.mxu1 %v4157_v21 }
 0xce4   : > { %3908 = vmatprep.subr.bf16.mxu1 %v4242_v0 }
 0xce7   : > { %3909 = vmatpush3.bf16.msra.mxu1 %v4160_v24 }
 0xd8a   : > { %v2607_v25 = vpop.f32.mrf.mxu1 }
 0xd8b   : > { %v2613_v13 = vrot.slane %v2607_v25, 7  ;;  %v2615_v26 = vrot.slane %v2607_v25, 1  ;;  %v2667_v27 = vpack.c.bf16 %v2607_v25, %v2607_v25 }
 0xd8c   : > { %v3892_v28 = vpop.f32.mrf.mxu1 }
 0xd8d   : > { %v3393_v29 = vpack.c.bf16 %v2613_v13, %v2613_v13  ;;  %v3396_v30 = vpack.c.bf16 %v2615_v26, %v2615_v26  ;;  %2853 = vmatprep.mubr.bf16.mxu0 %v2667_v27 }
 0xd8e   : > { %v2610_v31 = vpop.f32.mrf.mxu1 }
 0xd8f   : > { %3394 = vmatmul.mubr.msk.bf16.vlgmr.msra.gmra.mxu0 %vm3224_vm11, %v3393_v29  ;;  %3911 = vmatmul.mubr.msk.bf16.vlgmr.msra.gmra.mxu1 %vm4667_vm14, %v3396_v30 }
 0xd90   : > { %v3893_v32 = vpop.f32.mrf.mxu1  ;;  %3916 = vmatprep.mubr.msk.bf16.mxu0 %vm4243_vm0, %v4242_v0 }
 0xe4f   : > { %v3638_v33 = vpop.f32.mrf.mxu0  ;;  %v2895_v34 = vpop.f32.mrf.mxu1 }
 0xe51   : > { %v3639_v36 = vpop.f32.mrf.mxu0  ;;  %v3912_v49 = vpop.f32.mrf.mxu1 }
 0xe52   : > { %v3640_v2 = vadd.f32 %v3639_v36, %v3638_v33 }
 0xe53   : > { %v3641_v37 = vpop.f32.mrf.mxu0  ;;  %v2898_v38 = vpop.f32.mrf.mxu1 }
 0xe54   : > { %v2856_v39 = vadd.f32 %v3640_v2, %v3367_v35 }
 0xe55   : > { %v3642_v40 = vpop.f32.mrf.mxu0  ;;  %v3913_v50 = vpop.f32.mrf.mxu1 }
 0xe56   : > { %v2896_v41 = vadd.f32 %v2895_v34, %v2856_v39 }
 0xe58   : > { %v2901_v3 = vmax.f32 %v2896_v41, 0.0 }
 0xe5a   : > { %v2905_v42 = vpack.c.bf16 %v2901_v3, %v2901_v3 }
 0xe5c   : > { %v2915_v43 = vsel %vm4668_vm9, %v2905_v42, 0 }
 0xe5d   : > { %3915 = vmatpush3.bf16.msra.mxu0 %v2915_v43 }
 0xe5e   : > { %3920 = vmatprep.subr.bf16.mxu0 %v4242_v0 }
 0xe60   : > { %3917 = vmatmul.mubr.msk.bf16.vlgmr.msra.gmra.mxu0 %vm4669_vm10, %v4161_v44 }
 0xe61   : > { %3921 = vmatpush3.bf16.msra.mxu0 %v4162_v45  ;;  %3936 = vmatprep.mubr.msk.bf16.mxu0 %vm4243_vm0, %v4242_v0 }
 0xe62   : > { %3922 = vmatprep.subr.bf16.mxu0 %v4242_v0 }
 0xe65   : > { %3923 = vmatpush3.bf16.msra.mxu0 %v4163_v46 }
 0xe66   : > { %3924 = vmatprep.subr.bf16.mxu0 %v4242_v0 }
 0xe69   : > { %3925 = vmatpush3.bf16.msra.mxu0 %v4164_v47 }
 0xe6a   : > { %3926 = vmatprep.subr.bf16.mxu0 %v4242_v0 }
 0xe6d   : > { %3927 = vmatpush3.bf16.msra.mxu0 %v4165_v48 }
 0xe6e   : > { %3928 = vmatprep.subr.bf16.mxu0 %v4242_v0 }
 0xe71   : > { %3929 = vmatpush3.bf16.msra.mxu0 %v4166_v51 }
 0xe72   : > { %3930 = vmatprep.subr.bf16.mxu0 %v4242_v0 }
 0xe75   : > { %3931 = vmatpush3.bf16.msra.mxu0 %v4167_v52 }
 0xe76   : > { %3932 = vmatprep.subr.bf16.mxu0 %v4242_v0 }
 0xe79   : > { %3933 = vmatpush3.bf16.msra.mxu0 %v4168_v53 }
 0xe7a   : > { %3934 = vmatprep.subr.bf16.mxu0 %v4242_v0 }
 0xe7d   : > { %3935 = vmatpush3.bf16.msra.mxu0 %v4169_v54 }
 0xf20   : > { %v2951_v55 = vpop.f32.mrf.mxu0 }
 0xf22   : > { %v3918_v56 = vpop.f32.mrf.mxu0 }
 0xf24   : > { %v2954_v57 = vpop.f32.mrf.mxu0 }
 0xf25   : > { %v2975_v58 = vpack.c.bf16 %v2954_v57, %v2951_v55 }
 0xf26   : > { %v3919_v59 = vpop.f32.mrf.mxu0 }
 0xf27   : > { %3937 = vmatmul.mubr.bf16.vlgmr.msra.gmra.mxu0 %v2975_v58 }
 0xfe7   : > { %v3058_v60 = vpop.f32.mrf.mxu0 }
 0xfe8   : > { %3065 = vst [vmem:[%s256_s23] sm:$0xff] %v3058_v60 }
 0xfe9   : > { %v3938_v61 = vpop.f32.mrf.mxu0 }
 0xfeb   : > { %v3061_v62 = vpop.f32.mrf.mxu0 }
 0xfec   : > { %3066 = vst [vmem:[%s256_s23 + $0x8] sm:$0xff] %v3061_v62 }
 0xfed   : > { %v3939_v63 = vpop.f32.mrf.mxu0 }
 0xfee PF: > { %s17_s18 = sadd.s32 1, %s4236_s18  }
 0xfef   : > { %p14_p3 = scmp.ge.s32.totalorder %s17_s18, 4  }
 0xff1   :  { %16 = sbr.rel (!%p14_p3) target bundleno = 2 (0x2), region = 99 }
 0xff6   :  { %3089 = vsyncpa [#allocation3], 1 }
 0xff7   :  { %3091 = vsyncpa [#allocation3 + $0x1], 1 }
 0xff8   :  { %3092 = vsyncpa [#allocation5], 1 }

</bundles_post_ra>
